<compile_context>
chip_gen: v7x
topology: tpu7x:2x2x1
jax: 0.10.0
libtpu: 0.0.40
codegen_flags: <defaults>
</compile_context>

<pallas_src>
import functools

import numpy as np
import jax
import jax.numpy as jnp
from jax.experimental import pallas as pl
from jax.experimental.pallas import tpu as pltpu

vgg_cfg = [64, 64, 'M', 128, 128, 'M', 256, 256, 256, 'C',
           512, 512, 512, 'M', 512, 512, 512, 'M']


def _round_up(x, m):
    return (x + m - 1) // m * m


# ---------------------------------------------------------------------------
# Generation-gated budgets
# ---------------------------------------------------------------------------
def _tpu_vmem_bytes():
    default = 64 * 1024 * 1024
    try:
        fn = getattr(pltpu, "get_tpu_info", None)
        if fn is None:
            return default
        return int(getattr(fn(), "vmem_capacity_bytes", default))
    except Exception:
        return default


_VMEM_CAP = _tpu_vmem_bytes()
_BIG_VMEM = _VMEM_CAP >= 100 * 1024 * 1024          # v5e / v6e: 128 MiB VMEM
_VMEM_LIMIT = int(min(_VMEM_CAP * 3 // 4, 100 * 1024 * 1024))
_CONV_IN_BUDGET = (12 if _BIG_VMEM else 4) * 1024 * 1024
_CONV_MAX_TM = 4096 if _BIG_VMEM else 2048
_FC_TK_CAP = 6272                                    # divides 25088
_FC_TN_CAP = 2048 if _BIG_VMEM else 1024
_POOL_BLOCK_BUDGET = 2 * 1024 * 1024


def _pick_conv_rows(H, Wp, K3):
    """Largest divisor TR of H whose (TR+2, Wp, K3) bf16 window fits the VMEM
    budget and whose output tile TR*Wp stays <= _CONV_MAX_TM rows."""
    cap = max(1, min(H, _CONV_MAX_TM // max(Wp, 1)))
    for d in range(cap, 0, -1):
        if H % d == 0 and (d + 2) * Wp * K3 * 2 <= _CONV_IN_BUDGET:
            return d
    return 1


def _pick_pool_rows(R, row_bytes):
    cap = max(1, min(R, _POOL_BLOCK_BUDGET // max(row_bytes, 1)))
    for d in range(cap, 0, -1):
        if R % d == 0:
            return d
    return 1


def _pick_fc_tile(dim, cap):
    """Return (tile, padded_dim)."""
    if dim <= 128:
        return 128, 128                      # pad up for lane-dense tiles
    if dim <= cap:
        return dim, dim
    t = (cap // 128) * 128
    while t >= 128:
        if dim % t == 0:
            return t, dim
        t -= 128
    t = (cap // 128) * 128
    return t, _round_up(dim, t)


# ---------------------------------------------------------------------------
# Conv2d(3x3, pad=1) + ReLU
#   glue: W-direction im2col only, non-overlapping row tiles + tiny 2-row halo
#   kernel: 3 value-level MXU matmuls (one per dy tap) summed + bias + ReLU
# ---------------------------------------------------------------------------
def _conv3x3_kernel(main_ref, halo_ref, w_ref, b_ref, o_ref, win_ref, *, Wp, TM):
    # main_ref: (1, 1, TM, K3) bf16       non-overlapping row tile (W-im2col'd)
    # halo_ref: (1, 1, 2*Wp, K3) bf16     the two padded rows below the tile
    # w_ref   : (3, K3, tn) bf16          one slab per dy tap
    # b_ref   : (1, tn) f32
    # o_ref   : (1, 1, TM, tn) bf16
    # win_ref : (TM + 2*Wp, K3) bf16      VMEM staging window (sublane aligned)
    win_ref[0:TM, :] = main_ref[0, 0, :, :]
    win_ref[TM:, :] = halo_ref[0, 0, :, :]
    acc = jnp.dot(main_ref[0, 0, :, :], w_ref[0, :, :],
                  preferred_element_type=jnp.float32)
    acc = acc + jnp.dot(win_ref[Wp:Wp + TM, :], w_ref[1, :, :],
                        preferred_element_type=jnp.float32)
    acc = acc + jnp.dot(win_ref[2 * Wp:2 * Wp + TM, :], w_ref[2, :, :],
                        preferred_element_type=jnp.float32)
    out = jnp.maximum(acc + b_ref[...], 0.0)
    o_ref[0, 0, :, :] = out.astype(o_ref.dtype)


def conv3x3_relu(x, w_tap, bias):
    """x: (N,H,W,Cin) bf16; w_tap: (3, 3*Cin, Cout) bf16; bias: (1, Cout) f32."""
    N, H, W, Cin = x.shape
    K3, Cout = w_tap.shape[1], w_tap.shape[2]
    Wp = _round_up(W, 8)                 # sublane-aligned padded row width

    TR = _pick_conv_rows(H, Wp, K3)
    n_mt = H // TR
    TM = TR * Wp

    # Spatial zero-pad (conv pad=1) + width pad W -> Wp on the right.
    xp = jnp.pad(x, ((0, 0), (1, 1), (1, Wp - W + 1), (0, 0)))   # (N,H+2,Wp+2,Cin)

    # W-direction im2col of the H real output rows (non-overlapping row tiles).
    main = jnp.concatenate([xp[:, :H, dx:dx + Wp, :] for dx in range(3)],
                           axis=-1).reshape(N, n_mt, TM, K3)
    # 2-row halo below each tile: padded rows (m+1)*TR and (m+1)*TR + 1.
    if n_mt == 1:
        hrows = xp[:, H:H + 2]                                   # (N,2,Wp+2,Cin)
    else:
        idx = ((np.arange(n_mt)[:, None] + 1) * TR
               + np.arange(2)[None, :]).reshape(-1)
        hrows = xp[:, idx]                                       # (N,2*n_mt,...)
    halo = jnp.concatenate([hrows[:, :, dx:dx + Wp, :] for dx in range(3)],
                           axis=-1).reshape(N, n_mt, 2 * Wp, K3)

    tn = Cout if Cout <= 512 else 512
    if Cout % tn:
        tn = Cout
    # v7x has 2 TensorCores: ensure at least a 2-step parallel grid.
    if N * n_mt * (Cout // tn) < 2 and Cout % 256 == 0:
        tn = Cout // 2

    out = pl.pallas_call(
        functools.partial(_conv3x3_kernel, Wp=Wp, TM=TM),
        out_shape=jax.ShapeDtypeStruct((N, n_mt, TM, Cout), x.dtype),
        grid_spec=pltpu.PrefetchScalarGridSpec(
            num_scalar_prefetch=0,
            grid=(N, n_mt, Cout // tn),
            in_specs=[
                pl.BlockSpec((1, 1, TM, K3), lambda n, m, j: (n, m, 0, 0)),
                pl.BlockSpec((1, 1, 2 * Wp, K3), lambda n, m, j: (n, m, 0, 0)),
                pl.BlockSpec((3, K3, tn), lambda n, m, j: (0, 0, j)),
                pl.BlockSpec((1, tn), lambda n, m, j: (0, j)),
            ],
            out_specs=pl.BlockSpec((1, 1, TM, tn),
                                   lambda n, m, j: (n, m, 0, j)),
            scratch_shapes=[pltpu.VMEM((TM + 2 * Wp, K3), x.dtype)],
        ),
        compiler_params=pltpu.CompilerParams(
            dimension_semantics=("parallel", "parallel", "parallel"),
            vmem_limit_bytes=_VMEM_LIMIT),
    )(main, halo, w_tap, bias)

    out = out.reshape(N, H, Wp, Cout)
    if Wp != W:
        out = out[:, :, :W, :]
    return out


# ---------------------------------------------------------------------------
# MaxPool2d(kernel=2, stride=2)  (tiled; 2x2 window reduced in-register)
# ---------------------------------------------------------------------------
def _maxpool_kernel(x_ref, o_ref, *, C):
    # x_ref: (TR, 2, Wo, 2*C); o_ref: (TR, Wo, C)
    a = jnp.maximum(x_ref[:, 0, :, :], x_ref[:, 1, :, :])        # H-direction
    o_ref[...] = jnp.maximum(a[..., :C], a[..., C:])             # W-direction


def maxpool2x2(x, ceil_mode=False):
    """x: (N, H, W, C) -> (N, Ho, Wo, C) (floor or ceil per torch semantics)."""
    N, H, W, C = x.shape
    if ceil_mode and (H % 2 or W % 2):
        Hp, Wp = _round_up(H, 2), _round_up(W, 2)
        x = jnp.pad(x, ((0, 0), (0, Hp - H), (0, Wp - W), (0, 0)),
                    constant_values=-jnp.inf)
    else:
        Hp, Wp = (H // 2) * 2, (W // 2) * 2
        if (Hp, Wp) != (H, W):
            x = x[:, :Hp, :Wp, :]
    Ho, Wo = Hp // 2, Wp // 2
    R = N * Ho
    # Free (contiguous) reshape: rows come in (top, bottom) pairs, the W pair
    # is folded into the lane dimension -> no strided gathers in HBM.
    x6 = x.reshape(R, 2, Wo, 2 * C)
    row_bytes = 2 * Wo * 2 * C * x.dtype.itemsize
    TR = _pick_pool_rows(R, row_bytes)

    out = pl.pallas_call(
        functools.partial(_maxpool_kernel, C=C),
        out_shape=jax.ShapeDtypeStruct((R, Wo, C), x.dtype),
        grid_spec=pltpu.PrefetchScalarGridSpec(
            num_scalar_prefetch=0,
            grid=(R // TR,),
            in_specs=[pl.BlockSpec((TR, 2, Wo, 2 * C),
                                   lambda i: (i, 0, 0, 0))],
            out_specs=pl.BlockSpec((TR, Wo, C), lambda i: (i, 0, 0)),
        ),
        compiler_params=pltpu.CompilerParams(
            dimension_semantics=("parallel",)),
    )(x6)
    return out.reshape(N, Ho, Wo, C)


# ---------------------------------------------------------------------------
# Linear: int8 weights + per-column scale, fused matmul + dequant + bias(+ReLU)
# ---------------------------------------------------------------------------
def _fc_kernel(a_ref, w_ref, s_ref, b_ref, o_ref, acc_ref, *, relu):
    @pl.when(pl.program_id(2) == 0)
    def _():
        acc_ref[...] = jnp.zeros_like(acc_ref)

    # int8 weights dequantized to bf16 on the VPU; scale applied after k loop.
    acc_ref[...] += jnp.dot(a_ref[...], w_ref[...].astype(jnp.bfloat16),
                            preferred_element_type=jnp.float32)

    @pl.when(pl.program_id(2) == pl.num_programs(2) - 1)
    def _():
        out = acc_ref[...] * s_ref[...] + b_ref[...]
        if relu:
            out = jnp.maximum(out, 0.0)
        o_ref[...] = out.astype(o_ref.dtype)


def linear(x, w_q, scale, bias, relu, out_dtype):
    """x: (M, K); w_q: (K, N) int8; scale, bias: (1, N) f32."""
    M, K = x.shape
    K2, N = w_q.shape
    assert K == K2
    Mp = _round_up(M, 8)
    tm = Mp if Mp <= 256 else 256
    Mp = _round_up(Mp, tm)
    tn, Np = _pick_fc_tile(N, _FC_TN_CAP)
    tk, Kp = _pick_fc_tile(K, _FC_TK_CAP)

    a = x.astype(jnp.bfloat16)
    if (Mp, Kp) != (M, K):
        a = jnp.pad(a, ((0, Mp - M), (0, Kp - K)))
    w = w_q if (Kp, Np) == (K, N) else jnp.pad(w_q, ((0, Kp - K), (0, Np - N)))
    s = scale if Np == N else jnp.pad(scale, ((0, 0), (0, Np - N)))
    b = bias if Np == N else jnp.pad(bias, ((0, 0), (0, Np - N)))

    out = pl.pallas_call(
        functools.partial(_fc_kernel, relu=relu),
        out_shape=jax.ShapeDtypeStruct((Mp, Np), out_dtype),
        grid_spec=pltpu.PrefetchScalarGridSpec(
            num_scalar_prefetch=0,
            grid=(Mp // tm, Np // tn, Kp // tk),
            in_specs=[
                pl.BlockSpec((tm, tk), lambda i, j, k: (i, k)),
                pl.BlockSpec((tk, tn), lambda i, j, k: (k, j)),
                pl.BlockSpec((1, tn), lambda i, j, k: (0, j)),
                pl.BlockSpec((1, tn), lambda i, j, k: (0, j)),
            ],
            out_specs=pl.BlockSpec((tm, tn), lambda i, j, k: (i, j)),
            scratch_shapes=[pltpu.VMEM((tm, tn), jnp.float32)],
        ),
        compiler_params=pltpu.CompilerParams(
            dimension_semantics=("parallel", "parallel", "arbitrary"),
            vmem_limit_bytes=_VMEM_LIMIT),
    )(a, w, s, b)
    return out[:M, :N]


# ---------------------------------------------------------------------------
# AdaptiveAvgPool2d((7,7))  (tiny windowed reduction -> plain JAX glue)
# ---------------------------------------------------------------------------
def adaptive_avg_pool(x, oh, ow):
    x = x.astype(jnp.float32)
    N, H, W, C = x.shape
    rows = []
    for i in range(oh):
        h0 = (i * H) // oh
        h1 = -((-(i + 1) * H) // oh)
        cols = []
        for j in range(ow):
            w0 = (j * W) // ow
            w1 = -((-(j + 1) * W) // ow)
            cols.append(jnp.mean(x[:, h0:h1, w0:w1, :], axis=(1, 2)))
        rows.append(jnp.stack(cols, axis=1))          # (N, ow, C)
    return jnp.stack(rows, axis=1)                    # (N, oh, ow, C) f32


# ---------------------------------------------------------------------------
# Parameters: deterministic He-style synthetic init (torch layout), then a
# one-time packing pass (layout transpose, bf16 conv weights, int8-quantized
# fc weights with per-column scales) hoisted out of forward.
# ---------------------------------------------------------------------------
def init_params(key):
    params = {'conv': [], 'fc': []}
    in_c = 3
    k = key
    for v in vgg_cfg:
        if v in ('M', 'C'):
            continue
        k, k1 = jax.random.split(k)
        w = jax.random.normal(k1, (v, in_c, 3, 3), jnp.float32) * \
            (2.0 / (in_c * 9)) ** 0.5
        b = jnp.zeros((v,), jnp.float32)
        params['conv'].append((w, b))
        in_c = v
    for (din, dout) in [(512 * 7 * 7, 4096), (4096, 4096), (4096, 2)]:
        k, k1 = jax.random.split(k)
        w = jax.random.normal(k1, (dout, din), jnp.float32) * (2.0 / din) ** 0.5
        b = jnp.zeros((dout,), jnp.float32)
        params['fc'].append((w, b))
    return params


def pack_params(params):
    packed = {'conv': [], 'fc': []}
    for w, b in params['conv']:
        cout, cin = w.shape[0], w.shape[1]
        # (Cout,Cin,ky,kx) -> (ky, kx*Cin, Cout): one bf16 slab per dy tap,
        # channel order (kx-major, cin-minor) matching the W-im2col columns.
        w_tap = jnp.transpose(w, (2, 3, 1, 0)).reshape(3, 3 * cin, cout)
        packed['conv'].append((w_tap.astype(jnp.bfloat16),
                               b.reshape(1, cout).astype(jnp.float32)))
    for w, b in params['fc']:
        dout = w.shape[0]
        wt = jnp.transpose(w)                                     # (din, dout)
        s = jnp.maximum(jnp.max(jnp.abs(wt), axis=0, keepdims=True),
                        1e-8) / 127.0                             # (1, dout)
        wq = jnp.clip(jnp.round(wt / s), -127, 127).astype(jnp.int8)
        packed['fc'].append((wq, s.astype(jnp.float32),
                             b.reshape(1, dout).astype(jnp.float32)))
    return packed


# ---------------------------------------------------------------------------
# Full forward pass (matches vgg16.forward semantics)
# ---------------------------------------------------------------------------
def vgg16_forward(packed, x_nchw):
    x = jnp.transpose(x_nchw, (0, 2, 3, 1)).astype(jnp.bfloat16)  # NCHW -> NHWC
    ci = 0
    for v in vgg_cfg:
        if v == 'M':
            x = maxpool2x2(x, ceil_mode=False)
        elif v == 'C':
            x = maxpool2x2(x, ceil_mode=True)
        else:
            w_tap, b = packed['conv'][ci]
            ci += 1
            x = conv3x3_relu(x, w_tap, b)
    x = adaptive_avg_pool(x, 7, 7)                    # (N,7,7,512) f32
    # torch.flatten(x, 1) on NCHW ordering:
    x = jnp.transpose(x, (0, 3, 1, 2)).reshape(x.shape[0], -1)    # (N, 25088)

    (w1, s1, b1), (w2, s2, b2), (w3, s3, b3) = packed['fc']
    x = linear(x, w1, s1, b1, relu=True, out_dtype=jnp.bfloat16)
    # TODO(synk): nn.Dropout treated as identity (eval semantics; torch RNG not reproducible).
    x = linear(x, w2, s2, b2, relu=True, out_dtype=jnp.bfloat16)
    x = linear(x, w3, s3, b3, relu=False, out_dtype=jnp.float32)
    return x


if __name__ == "__main__":
    key = jax.random.PRNGKey(0)
    k_params, k_x = jax.random.split(key)
    params = pack_params(init_params(k_params))
    # small VGG-compatible input: batch=2, 3 channels, 32x32 spatial
    x = jax.random.normal(k_x, (2, 3, 32, 32), jnp.float32)

    out = vgg16_forward(params, x)
    out = jax.block_until_ready(out)
    assert out.shape == (2, 2), out.shape
    assert out.dtype == jnp.float32
    print("KERNEL_OK")
</pallas_src>

<mosaic_0001>
module attributes {stable_mosaic.version = 11 : i64} {
  func.func @_conv3x3_kernel(%arg0: i32, %arg1: i32, %arg2: i32, %arg3: memref<1x1x1024x9xbf16, #tpu.memory_space<vmem>>, %arg4: memref<1x1x64x9xbf16, #tpu.memory_space<vmem>>, %arg5: memref<3x9x64xbf16, #tpu.memory_space<vmem>>, %arg6: memref<1x64xf32, #tpu.memory_space<vmem>>, %arg7: memref<1x1x1024x64xbf16, #tpu.memory_space<vmem>>, %arg8: memref<1088x9xbf16, #tpu.memory_space<vmem>>) attributes {dimension_semantics = [#tpu.dimension_semantics<parallel>, #tpu.dimension_semantics<parallel>, #tpu.dimension_semantics<parallel>], iteration_bounds = array<i64: 2, 1, 1>, scalar_prefetch = 0 : i64, scratch_operands = 1 : i64, tpu.core_type = #tpu.core_type<tc>, window_params = [{transform_indices = @transform_0, window_bounds = array<i64: 1, 1, 1024, 9>}, {transform_indices = @transform_1, window_bounds = array<i64: 1, 1, 64, 9>}, {transform_indices = @transform_2, window_bounds = array<i64: 3, 9, 64>}, {transform_indices = @transform_3, window_bounds = array<i64: 1, 64>}, {transform_indices = @transform_4, window_bounds = array<i64: 1, 1, 1024, 64>}]} {
    %c0 = arith.constant 0 : index
    %c0_0 = arith.constant 0 : index
    %c0_1 = arith.constant 0 : index
    %c0_2 = arith.constant 0 : index
    %0 = vector.load %arg3[%c0, %c0_0, %c0_1, %c0_2] : memref<1x1x1024x9xbf16, #tpu.memory_space<vmem>>, vector<1x1x1024x9xbf16>
    %1 = vector.shape_cast %0 : vector<1x1x1024x9xbf16> to vector<1024x9xbf16>
    %c0_3 = arith.constant 0 : index
    %c0_4 = arith.constant 0 : index
    %2 = vector.load %arg8[%c0_3, %c0_4] : memref<1088x9xbf16, #tpu.memory_space<vmem>>, vector<1024x9xbf16>
    tpu.vector_store %arg8[%c0_3, %c0_4], %1 {strides = array<i32>} : memref<1088x9xbf16, #tpu.memory_space<vmem>>, vector<1024x9xbf16>,
    %c0_5 = arith.constant 0 : index
    %c0_6 = arith.constant 0 : index
    %c0_7 = arith.constant 0 : index
    %c0_8 = arith.constant 0 : index
    %3 = vector.load %arg4[%c0_5, %c0_6, %c0_7, %c0_8] : memref<1x1x64x9xbf16, #tpu.memory_space<vmem>>, vector<1x1x64x9xbf16>
    %4 = vector.shape_cast %3 : vector<1x1x64x9xbf16> to vector<64x9xbf16>
    %c1024 = arith.constant 1024 : index
    %c0_9 = arith.constant 0 : index
    %5 = vector.load %arg8[%c1024, %c0_9] : memref<1088x9xbf16, #tpu.memory_space<vmem>>, vector<64x9xbf16>
    tpu.vector_store %arg8[%c1024, %c0_9], %4 {strides = array<i32>} : memref<1088x9xbf16, #tpu.memory_space<vmem>>, vector<64x9xbf16>,
    %c0_10 = arith.constant 0 : index
    %c0_11 = arith.constant 0 : index
    %c0_12 = arith.constant 0 : index
    %c0_13 = arith.constant 0 : index
    %6 = vector.load %arg3[%c0_10, %c0_11, %c0_12, %c0_13] : memref<1x1x1024x9xbf16, #tpu.memory_space<vmem>>, vector<1x1x1024x9xbf16>
    %7 = vector.shape_cast %6 : vector<1x1x1024x9xbf16> to vector<1024x9xbf16>
    %c0_14 = arith.constant 0 : index
    %c0_15 = arith.constant 0 : index
    %c0_16 = arith.constant 0 : index
    %8 = vector.load %arg5[%c0_14, %c0_15, %c0_16] : memref<3x9x64xbf16, #tpu.memory_space<vmem>>, vector<1x9x64xbf16>
    %9 = vector.shape_cast %8 : vector<1x9x64xbf16> to vector<9x64xbf16>
    %cst = arith.constant dense<0.000000e+00> : vector<1024x64xf32>
    %10 = tpu.matmul %7, %9, %cst {dimension_numbers = #tpu.dot_dimension_numbers<[1], [0], [0], [1], [0, 0, 1, 1], [], []>} : vector<1024x9xbf16>, vector<9x64xbf16>, vector<1024x64xf32> -> vector<1024x64xf32>
    %c32 = arith.constant 32 : index
    %c0_17 = arith.constant 0 : index
    %11 = vector.load %arg8[%c32, %c0_17] : memref<1088x9xbf16, #tpu.memory_space<vmem>>, vector<1024x9xbf16>
    %c1 = arith.constant 1 : index
    %c0_18 = arith.constant 0 : index
    %c0_19 = arith.constant 0 : index
    %12 = vector.load %arg5[%c1, %c0_18, %c0_19] : memref<3x9x64xbf16, #tpu.memory_space<vmem>>, vector<1x9x64xbf16>
    %13 = vector.shape_cast %12 : vector<1x9x64xbf16> to vector<9x64xbf16>
    %cst_20 = arith.constant dense<0.000000e+00> : vector<1024x64xf32>
    %14 = tpu.matmul %11, %13, %cst_20 {dimension_numbers = #tpu.dot_dimension_numbers<[1], [0], [0], [1], [0, 0, 1, 1], [], []>} : vector<1024x9xbf16>, vector<9x64xbf16>, vector<1024x64xf32> -> vector<1024x64xf32>
    %15 = arith.addf %10, %14 : vector<1024x64xf32>
    %c64 = arith.constant 64 : index
    %c0_21 = arith.constant 0 : index
    %16 = vector.load %arg8[%c64, %c0_21] : memref<1088x9xbf16, #tpu.memory_space<vmem>>, vector<1024x9xbf16>
    %c2 = arith.constant 2 : index
    %c0_22 = arith.constant 0 : index
    %c0_23 = arith.constant 0 : index
    %17 = vector.load %arg5[%c2, %c0_22, %c0_23] : memref<3x9x64xbf16, #tpu.memory_space<vmem>>, vector<1x9x64xbf16>
    %18 = vector.shape_cast %17 : vector<1x9x64xbf16> to vector<9x64xbf16>
    %cst_24 = arith.constant dense<0.000000e+00> : vector<1024x64xf32>
    %19 = tpu.matmul %16, %18, %cst_24 {dimension_numbers = #tpu.dot_dimension_numbers<[1], [0], [0], [1], [0, 0, 1, 1], [], []>} : vector<1024x9xbf16>, vector<9x64xbf16>, vector<1024x64xf32> -> vector<1024x64xf32>
    %20 = arith.addf %15, %19 : vector<1024x64xf32>
    %c0_25 = arith.constant 0 : index
    %c0_26 = arith.constant 0 : index
    %21 = vector.load %arg6[%c0_25, %c0_26] : memref<1x64xf32, #tpu.memory_space<vmem>>, vector<1x64xf32>
    %22 = vector.broadcast %21 : vector<1x64xf32> to vector<1024x64xf32>
    %23 = arith.addf %20, %22 : vector<1024x64xf32>
    %cst_27 = arith.constant 0.000000e+00 : f32
    %24 = vector.broadcast %cst_27 : f32 to vector<1024x64xf32>
    %25 = arith.maximumf %23, %24 : vector<1024x64xf32>
    %26 = arith.truncf %25 : vector<1024x64xf32> to vector<1024x64xbf16>
    %c0_28 = arith.constant 0 : index
    %c0_29 = arith.constant 0 : index
    %c0_30 = arith.constant 0 : index
    %c0_31 = arith.constant 0 : index
    %27 = vector.load %arg7[%c0_28, %c0_29, %c0_30, %c0_31] : memref<1x1x1024x64xbf16, #tpu.memory_space<vmem>>, vector<1x1x1024x64xbf16>
    %28 = vector.shape_cast %27 : vector<1x1x1024x64xbf16> to vector<1024x64xbf16>
    %29 = vector.shape_cast %26 : vector<1024x64xbf16> to vector<1x1x1024x64xbf16>
    tpu.vector_store %arg7[%c0_28, %c0_29, %c0_30, %c0_31], %29 {strides = array<i32>} : memref<1x1x1024x64xbf16, #tpu.memory_space<vmem>>, vector<1x1x1024x64xbf16>,
    return
  }
  func.func @transform_0(%arg0: i32, %arg1: i32, %arg2: i32) -> (i32, i32, i32, i32) {
    %c0_i32 = arith.constant 0 : i32
    %c0_i32_0 = arith.constant 0 : i32
    %c0_i32_1 = arith.constant 0 : i32
    return %arg0, %arg1, %c0_i32, %c0_i32_0 : i32, i32, i32, i32
  }
  func.func @transform_1(%arg0: i32, %arg1: i32, %arg2: i32) -> (i32, i32, i32, i32) {
    %c0_i32 = arith.constant 0 : i32
    %c0_i32_0 = arith.constant 0 : i32
    %c0_i32_1 = arith.constant 0 : i32
    return %arg0, %arg1, %c0_i32, %c0_i32_0 : i32, i32, i32, i32
  }
  func.func @transform_2(%arg0: i32, %arg1: i32, %arg2: i32) -> (i32, i32, i32) {
    %c0_i32 = arith.constant 0 : i32
    %c0_i32_0 = arith.constant 0 : i32
    %c0_i32_1 = arith.constant 0 : i32
    return %c0_i32, %c0_i32_0, %arg2 : i32, i32, i32
  }
  func.func @transform_3(%arg0: i32, %arg1: i32, %arg2: i32) -> (i32, i32) {
    %c0_i32 = arith.constant 0 : i32
    %c0_i32_0 = arith.constant 0 : i32
    return %c0_i32, %arg2 : i32, i32
  }
  func.func @transform_4(%arg0: i32, %arg1: i32, %arg2: i32) -> (i32, i32, i32, i32) {
    %c0_i32 = arith.constant 0 : i32
    %c0_i32_0 = arith.constant 0 : i32
    return %arg0, %arg1, %c0_i32, %arg2 : i32, i32, i32, i32
  }
}

</mosaic_0001>

<bundles_post_ra>
// kernel: tpu_custom_call.1
= control target key start
LH: loop header
LB: loop body
LE: loop exit
PB: predicated region body
PF: predicated region fallthrough
CT: control target
= control target key end

     0   :  { %s6597_s15 = smov 0   ;;  %s6599_s16 = smov 0   ;;  %s7878_s0 = inlined_call_operand.vmem [shape: bf16[2,1,1024,9], index: 0, kind: input, shape index: {}]   ;;  %s7879_s1 = inlined_call_operand.vmem [shape: bf16[2,1,64,9], index: 1, kind: input, shape index: {}]   ;;  %s7880_s2 = inlined_call_operand.vmem [shape: bf16[3,9,64], index: 2, kind: input, shape index: {}]   ;;  %s7881_s3 = inlined_call_operand.vmem [shape: f32[1,64], index: 3, kind: input, shape index: {}]   ;;  %s7882_s4 = inlined_call_operand.vmem [shape: bf16[2,1,1024,64], index: 4, kind: output, shape index: {}]  }
   0x1   :  { %s6601_s17 = smov 0  }
   0x2 LB: > { %s33_s18 = sadd.s32 1, %s6565_s16  ;;  %p4943_p0 = scmp.ge.s32.totalorder %s6569_s17, 1  ;;  %s6569_s17 = sphi %s6601_s17, %s14_s17   ;;  %s6565_s16 = sphi %s6599_s16, %s7918_s16   ;;  %s6561_s15 = sphi %s6597_s15, %s7917_s15  }
   0x3   : > { %p35_p1 = scmp.ge.s32.totalorder %s33_s18, 2  ;;  %p224_p2 = scmp.lt.s32.totalorder %s6569_s17, 3 }
   0x5   : > { %s7920_s18 = smov (%p35_p1, %s33_s18), 0  ;;  %p225_p3 = pnand %p4943_p0, %p224_p2 }
   0x7   : > { %228 = sbr.rel (%p225_p3) target bundleno = 630 (0x276), region = 36 }
   0xe   : > { %vm1322_vm0 = vcmask 1043456   ;;  %vm1323_vm1 = vcmask 1044480   ;;  %v6411_v0 = vld [vmem:[%s7880_s2] sm:$0x1f]   ;;  %p277_p4 = scmp.lt.s32.totalorder %s6561_s15, 1  ;;  %v6571_v1 = vmov 65535  }
   0xf   : > { %v1324_v2 = vsel %vm1322_vm0, 4294967295, %v6571_v1  ;;  %v6416_v4 = vld [vmem:[%s7880_s2 + $0x8] sm:$0x1f]   ;;  %v6419_v6 = vld [vmem:[%s7880_s2 + $0x10] sm:$0x1f]   ;;  %vm827_vm2 = vcmask 72704  }
  0x10   : > { %v1325_v3 = vsel %vm1323_vm1, %v1324_v2, 0  ;;  %s7922_s15 = smov (!%p277_p4, %s6561_s15), 1  ;;  %vm4654_vm3 = vcmask 519168  }
  0x11   : > { %v2392_v5 = vand.u32 %v6411_v0, %v1325_v3  ;;  %s5412_s25 = sshll.u32 %s7922_s15, 9  ;;  %v1327_v7 = vand.u32 %v6416_v4, %v1325_v3  ;;  %v3204_v8 = vand.u32 %v6419_v6, %v1325_v3  ;;  %s5413_s29 = sshll.u32 %s7922_s15, 5 }
  0x12   : > { %s6632_s28 = scalar_lea.vmem %s7878_s0, %s5412_s25  ;;  %s6940_s6 = scalar_lea.vmem %s7879_s1, %s5413_s29 }
  0x13   : > { %5868 = vmatprep.subr.bf16.mxu0 %v2392_v5  ;;  %v6412_v9 = vld [vmem:[%s6632_s28] sm:$0xff]   ;;  %5738 = vmatprep.subr.bf16.mxu1 %v1327_v7  ;;  %v6413_v10 = vld [vmem:[%s6632_s28 + $0x8] sm:$0xff]   ;;  %v6417_v11 = vld [vmem:[%s6632_s28 + $0x10] sm:$0xff]   ;;  %s7379_s11 = scalar_lea.vmem %s7882_s4, %s5412_s25 }
  0x14   : > { %5869 = vmatpush3.bf16.msra.mxu0 %v2392_v5  ;;  %5739 = vmatpush3.bf16.msra.mxu1 %v1327_v7  ;;  %v6418_v12 = vld [vmem:[%s6632_s28 + $0x10] sm:$0xff]   ;;  %830 = vst.msk [vmem:[#allocation2 + $0x10] sm:$0xff] %vm827_vm2, %v6417_v11  ;;  %v6420_v13 = vld [vmem:[%s6632_s28 + $0x18] sm:$0xff]   ;;  %v6422_v15 = vld [vmem:[%s6632_s28 + $0x20] sm:$0xff]  }
  0x15   : > { %5998 = vmatprep.subr.bf16.mxu0 %v3204_v8  ;;  %5870 = vmatprep.mubr.msk.bf16.mxu0 %vm827_vm2, %v6412_v9  ;;  %v6421_v14 = vld [vmem:[%s6632_s28 + $0x18] sm:$0xff]   ;;  %831 = vst.msk [vmem:[#allocation2 + $0x18] sm:$0xff] %vm827_vm2, %v6420_v13  ;;  %v6423_v16 = vld [vmem:[%s6632_s28 + $0x20] sm:$0xff]   ;;  %832 = vst.msk [vmem:[#allocation2 + $0x20] sm:$0xff] %vm827_vm2, %v6422_v15 }
  0x16   : > { %6128 = vmatprep.subr.bf16.mxu1 %v2392_v5  ;;  %v6424_v17 = vld [vmem:[%s6632_s28 + $0x28] sm:$0xff]   ;;  %v6426_v18 = vld [vmem:[%s6632_s28 + $0x30] sm:$0xff]   ;;  %v6428_v22 = vld [vmem:[%s6632_s28 + $0x38] sm:$0xff]  }
  0x17   : > { %5871 = vmatmul.mubr.msk.bf16.vlgmr.msra.gmra.mrb[0].mxu0 %vm827_vm2, %v6413_v10  ;;  %833 = vst.msk [vmem:[#allocation2 + $0x28] sm:$0xff] %vm827_vm2, %v6424_v17  ;;  %v6425_v20 = vld [vmem:[%s6632_s28 + $0x28] sm:$0xff]   ;;  %834 = vst.msk [vmem:[#allocation2 + $0x30] sm:$0xff] %vm827_vm2, %v6426_v18  ;;  %v6427_v23 = vld [vmem:[%s6632_s28 + $0x30] sm:$0xff]  }
  0x18   : > { %5999 = vmatpush3.bf16.msra.mxu0 %v3204_v8  ;;  %5874 = vmatprep.mubr.msk.bf16.mxu0 %vm827_vm2, %v6418_v12  ;;  %835 = vst.msk [vmem:[#allocation2 + $0x38] sm:$0xff] %vm827_vm2, %v6428_v22  ;;  %v6430_v25 = vld [vmem:[%s6632_s28 + $0x40] sm:$0xff]   ;;  %v6432_v26 = vld [vmem:[%s6632_s28 + $0x48] sm:$0xff]   ;;  %v6434_v29 = vld [vmem:[%s6632_s28 + $0x50] sm:$0xff]  }
  0x19   : > { %836 = vst.msk [vmem:[#allocation2 + $0x40] sm:$0xff] %vm827_vm2, %v6430_v25  ;;  %837 = vst.msk [vmem:[#allocation2 + $0x48] sm:$0xff] %vm827_vm2, %v6432_v26  ;;  %v6429_v30 = vld [vmem:[%s6632_s28 + $0x38] sm:$0xff]   ;;  %v6431_v31 = vld [vmem:[%s6632_s28 + $0x40] sm:$0xff]  }
  0x1a   : > { %838 = vst.msk [vmem:[#allocation2 + $0x50] sm:$0xff] %vm827_vm2, %v6434_v29  ;;  %v6436_v32 = vld [vmem:[%s6632_s28 + $0x58] sm:$0xff]   ;;  %v6438_v33 = vld [vmem:[%s6632_s28 + $0x60] sm:$0xff]   ;;  %v6440_v35 = vld [vmem:[%s6632_s28 + $0x68] sm:$0xff]  }
  0x1b   : > { %v1058_v19 = vld [vmem:[#allocation2 + $0x10] sm:$0xff]  ;;  %839 = vst.msk [vmem:[#allocation2 + $0x58] sm:$0xff] %vm827_vm2, %v6436_v32  ;;  %840 = vst.msk [vmem:[#allocation2 + $0x60] sm:$0xff] %vm827_vm2, %v6438_v33  ;;  %v6433_v37 = vld [vmem:[%s6632_s28 + $0x48] sm:$0xff]  }
  0x1c   : > { %5740 = vmatprep.mubr.msk.bf16.mxu1 %vm827_vm2, %v1058_v19  ;;  %v1059_v21 = vld [vmem:[#allocation2 + $0x18] sm:$0xff]  ;;  %v6659_v24 = vld [vmem:[#allocation2 + $0x20] sm:$0xff]  ;;  %841 = vst.msk [vmem:[#allocation2 + $0x68] sm:$0xff] %vm827_vm2, %v6440_v35  ;;  %v6442_v38 = vld [vmem:[%s6632_s28 + $0x70] sm:$0xff]  }
  0x1d   : > { %5741 = vmatmul.mubr.msk.bf16.vlgmr.msra.gmra.mrb[0].mxu1 %vm827_vm2, %v1059_v21  ;;  %v6435_v39 = vld [vmem:[%s6632_s28 + $0x50] sm:$0xff]   ;;  %842 = vst.msk [vmem:[#allocation2 + $0x70] sm:$0xff] %vm827_vm2, %v6442_v38  ;;  %v6444_v40 = vld [vmem:[%s6632_s28 + $0x78] sm:$0xff]   ;;  %v6446_v41 = vld [vmem:[%s6632_s28 + $0x80] sm:$0xff]  }
  0x1e   : > { %6129 = vmatpush3.bf16.msra.mxu1 %v2392_v5  ;;  %5744 = vmatprep.mubr.msk.bf16.mxu1 %vm827_vm2, %v6659_v24  ;;  %v6669_v27 = vld [vmem:[#allocation2 + $0x28] sm:$0xff]  ;;  %v6671_v28 = vld [vmem:[#allocation2 + $0x30] sm:$0xff]  ;;  %843 = vst.msk [vmem:[#allocation2 + $0x78] sm:$0xff] %vm827_vm2, %v6444_v40  ;;  %844 = vst.msk [vmem:[#allocation2 + $0x80] sm:$0xff] %vm827_vm2, %v6446_v41 }
  0x1f   : > { %5875 = vmatmul.mubr.msk.bf16.gmra.mrb[4].mxu0 %vm827_vm2, %v6421_v14  ;;  %v6687_v34 = vld [vmem:[#allocation2 + $0x38] sm:$0xff]  ;;  %v6448_v44 = vld [vmem:[%s6632_s28 + $0x88] sm:$0xff]   ;;  %v6439_v46 = vld [vmem:[%s6632_s28 + $0x60] sm:$0xff]  }
  0x20   : > { %5878 = vmatprep.mubr.msk.bf16.mxu0 %vm827_vm2, %v6423_v16  ;;  %v6691_v36 = vld [vmem:[#allocation2 + $0x40] sm:$0xff]  ;;  %v6707_v42 = vld [vmem:[#allocation2 + $0x48] sm:$0xff]  ;;  %v6437_v45 = vld [vmem:[%s6632_s28 + $0x58] sm:$0xff]   ;;  %845 = vst.msk [vmem:[#allocation2 + $0x88] sm:$0xff] %vm827_vm2, %v6448_v44 }
  0x21   : > { %v6709_v43 = vld [vmem:[#allocation2 + $0x50] sm:$0xff]  ;;  %v6452_v48 = vld [vmem:[%s6632_s28 + $0x98] sm:$0xff]   ;;  %v6441_v50 = vld [vmem:[%s6632_s28 + $0x68] sm:$0xff]  }
  0x22   : > { %v6450_v47 = vld [vmem:[%s6632_s28 + $0x90] sm:$0xff]   ;;  %v6725_v49 = vld [vmem:[#allocation2 + $0x58] sm:$0xff]  ;;  %847 = vst.msk [vmem:[#allocation2 + $0x98] sm:$0xff] %vm827_vm2, %v6452_v48  ;;  %v6454_v51 = vld [vmem:[%s6632_s28 + $0xa0] sm:$0xff]  }
  0x23   : > { %846 = vst.msk [vmem:[#allocation2 + $0x90] sm:$0xff] %vm827_vm2, %v6450_v47  ;;  %v6730_v52 = vld [vmem:[#allocation2 + $0x60] sm:$0xff]  ;;  %v6443_v53 = vld [vmem:[%s6632_s28 + $0x70] sm:$0xff]   ;;  %848 = vst.msk [vmem:[#allocation2 + $0xa0] sm:$0xff] %vm827_vm2, %v6454_v51 }
  0x24   : > { %v6456_v54 = vld [vmem:[%s6632_s28 + $0xa8] sm:$0xff]   ;;  %v6458_v55 = vld [vmem:[%s6632_s28 + $0xb0] sm:$0xff]   ;;  %v6460_v56 = vld [vmem:[%s6632_s28 + $0xb8] sm:$0xff]  }
  0x25   : > { %5745 = vmatmul.mubr.msk.bf16.gmra.mrb[4].mxu1 %vm827_vm2, %v6669_v27  ;;  %849 = vst.msk [vmem:[#allocation2 + $0xa8] sm:$0xff] %vm827_vm2, %v6456_v54  ;;  %850 = vst.msk [vmem:[#allocation2 + $0xb0] sm:$0xff] %vm827_vm2, %v6458_v55  ;;  %v6745_v57 = vld [vmem:[#allocation2 + $0x68] sm:$0xff]  ;;  %v6445_v58 = vld [vmem:[%s6632_s28 + $0x78] sm:$0xff]  }
  0x26   : > { %5748 = vmatprep.mubr.msk.bf16.mxu1 %vm827_vm2, %v6671_v28  ;;  %v6748_v59 = vld [vmem:[#allocation2 + $0x70] sm:$0xff]  ;;  %851 = vst.msk [vmem:[#allocation2 + $0xb8] sm:$0xff] %vm827_vm2, %v6460_v56  ;;  %v6462_v60 = vld [vmem:[%s6632_s28 + $0xc0] sm:$0xff]   ;;  %v6464_v62 = vld [vmem:[%s6632_s28 + $0xc8] sm:$0xff]  }
  0x27   : > { %5879 = vmatmul.mubr.msk.bf16.gmra.mrb[8].mxu0 %vm827_vm2, %v6425_v20  ;;  %v6447_v61 = vld [vmem:[%s6632_s28 + $0x80] sm:$0xff]   ;;  %852 = vst.msk [vmem:[#allocation2 + $0xc0] sm:$0xff] %vm827_vm2, %v6462_v60  ;;  %853 = vst.msk [vmem:[#allocation2 + $0xc8] sm:$0xff] %vm827_vm2, %v6464_v62  ;;  %v6466_v63 = vld [vmem:[%s6632_s28 + $0xd0] sm:$0xff]  }
  0x28   : > { %5882 = vmatprep.mubr.msk.bf16.mxu0 %vm827_vm2, %v6427_v23  ;;  %v6762_v0 = vld [vmem:[#allocation2 + $0x78] sm:$0xff]  ;;  %v6765_v1 = vld [vmem:[#allocation2 + $0x80] sm:$0xff]  ;;  %854 = vst.msk [vmem:[#allocation2 + $0xd0] sm:$0xff] %vm827_vm2, %v6466_v63  ;;  %v6449_v3 = vld [vmem:[%s6632_s28 + $0x88] sm:$0xff]  }
  0x29   : > { %v6468_v2 = vld [vmem:[%s6632_s28 + $0xd8] sm:$0xff]   ;;  %v6451_v4 = vld [vmem:[%s6632_s28 + $0x90] sm:$0xff]   ;;  %v6470_v5 = vld [vmem:[%s6632_s28 + $0xe0] sm:$0xff]  }
  0x2a   : > { %855 = vst.msk [vmem:[#allocation2 + $0xd8] sm:$0xff] %vm827_vm2, %v6468_v2  ;;  %856 = vst.msk [vmem:[#allocation2 + $0xe0] sm:$0xff] %vm827_vm2, %v6470_v5  ;;  %v6472_v6 = vld [vmem:[%s6632_s28 + $0xe8] sm:$0xff]   ;;  %v6474_v8 = vld [vmem:[%s6632_s28 + $0xf0] sm:$0xff]  }
  0x2b   : > { %v6780_v7 = vld [vmem:[#allocation2 + $0x88] sm:$0xff]  ;;  %857 = vst.msk [vmem:[#allocation2 + $0xe8] sm:$0xff] %vm827_vm2, %v6472_v6  ;;  %v6785_v9 = vld [vmem:[#allocation2 + $0x90] sm:$0xff]  ;;  %v6453_v10 = vld [vmem:[%s6632_s28 + $0x98] sm:$0xff]  }
  0x2c   : > { %858 = vst.msk [vmem:[#allocation2 + $0xf0] sm:$0xff] %vm827_vm2, %v6474_v8  ;;  %v6476_v11 = vld [vmem:[%s6632_s28 + $0xf8] sm:$0xff]   ;;  %v6455_v12 = vld [vmem:[%s6632_s28 + $0xa0] sm:$0xff]   ;;  %v6479_v14 = vld [vmem:[%s6632_s28 + $0x108] sm:$0xff]  }
  0x2d   : > { %5749 = vmatmul.mubr.msk.bf16.gmra.mrb[8].mxu1 %vm827_vm2, %v6687_v34  ;;  %859 = vst.msk [vmem:[#allocation2 + $0xf8] sm:$0xff] %vm827_vm2, %v6476_v11  ;;  %v6478_v13 = vld [vmem:[%s6632_s28 + $0x100] sm:$0xff]   ;;  %v6798_v15 = vld [vmem:[#allocation2 + $0x98] sm:$0xff]  ;;  %861 = vst.msk [vmem:[#allocation2 + $0x108] sm:$0xff] %vm827_vm2, %v6479_v14 }
  0x2e   : > { %5752 = vmatprep.mubr.msk.bf16.mxu1 %vm827_vm2, %v6691_v36  ;;  %860 = vst.msk [vmem:[#allocation2 + $0x100] sm:$0xff] %vm827_vm2, %v6478_v13  ;;  %v6480_v16 = vld [vmem:[%s6632_s28 + $0x110] sm:$0xff]   ;;  %v6457_v17 = vld [vmem:[%s6632_s28 + $0xa8] sm:$0xff]   ;;  %v6481_v18 = vld [vmem:[%s6632_s28 + $0x118] sm:$0xff]  }
  0x2f   : > { %5883 = vmatmul.mubr.msk.bf16.gmra.mrb[12].mxu0 %vm827_vm2, %v6429_v30  ;;  %v6807_v19 = vld [vmem:[#allocation2 + $0xa0] sm:$0xff]  ;;  %862 = vst.msk [vmem:[#allocation2 + $0x110] sm:$0xff] %vm827_vm2, %v6480_v16  ;;  %863 = vst.msk [vmem:[#allocation2 + $0x118] sm:$0xff] %vm827_vm2, %v6481_v18  ;;  %v6483_v21 = vld [vmem:[%s6632_s28 + $0x128] sm:$0xff]  }
  0x30   : > { %5886 = vmatprep.mubr.msk.bf16.mxu0 %vm827_vm2, %v6431_v31  ;;  %v6482_v20 = vld [vmem:[%s6632_s28 + $0x120] sm:$0xff]   ;;  %v6459_v22 = vld [vmem:[%s6632_s28 + $0xb0] sm:$0xff]   ;;  %865 = vst.msk [vmem:[#allocation2 + $0x128] sm:$0xff] %vm827_vm2, %v6483_v21  ;;  %v6485_v25 = vld [vmem:[%s6632_s28 + $0x138] sm:$0xff]  }
  0x31   : > { %864 = vst.msk [vmem:[#allocation2 + $0x120] sm:$0xff] %vm827_vm2, %v6482_v20  ;;  %v6484_v23 = vld [vmem:[%s6632_s28 + $0x130] sm:$0xff]   ;;  %867 = vst.msk [vmem:[#allocation2 + $0x138] sm:$0xff] %vm827_vm2, %v6485_v25  ;;  %v6486_v26 = vld [vmem:[%s6632_s28 + $0x140] sm:$0xff]  }
  0x32   : > { %866 = vst.msk [vmem:[#allocation2 + $0x130] sm:$0xff] %vm827_vm2, %v6484_v23  ;;  %v6487_v29 = vld [vmem:[%s6632_s28 + $0x148] sm:$0xff]   ;;  %868 = vst.msk [vmem:[#allocation2 + $0x140] sm:$0xff] %vm827_vm2, %v6486_v26  ;;  %v6488_v31 = vld [vmem:[%s6632_s28 + $0x150] sm:$0xff]  }
  0x33   : > { %v6828_v30 = vld [vmem:[#allocation2 + $0xa8] sm:$0xff]  ;;  %v6832_v32 = vld [vmem:[#allocation2 + $0xb0] sm:$0xff]  ;;  %869 = vst.msk [vmem:[#allocation2 + $0x148] sm:$0xff] %vm827_vm2, %v6487_v29  ;;  %v6461_v33 = vld [vmem:[%s6632_s28 + $0xb8] sm:$0xff]  }
  0x34   : > { %870 = vst.msk [vmem:[#allocation2 + $0x150] sm:$0xff] %vm827_vm2, %v6488_v31  ;;  %v6489_v35 = vld [vmem:[%s6632_s28 + $0x158] sm:$0xff]   ;;  %v6490_v38 = vld [vmem:[%s6632_s28 + $0x160] sm:$0xff]   ;;  %v6492_v40 = vld [vmem:[%s6632_s28 + $0x170] sm:$0xff]  }
  0x35   : > { %5753 = vmatmul.mubr.msk.bf16.gmra.mrb[12].mxu1 %vm827_vm2, %v6707_v42  ;;  %871 = vst.msk [vmem:[#allocation2 + $0x158] sm:$0xff] %vm827_vm2, %v6489_v35  ;;  %872 = vst.msk [vmem:[#allocation2 + $0x160] sm:$0xff] %vm827_vm2, %v6490_v38  ;;  %v6493_v41 = vld [vmem:[%s6632_s28 + $0x178] sm:$0xff]   ;;  %v6494_v47 = vld [vmem:[%s6632_s28 + $0x180] sm:$0xff]  }
  0x36   : > { %5756 = vmatprep.mubr.msk.bf16.mxu1 %vm827_vm2, %v6709_v43  ;;  %v6852_v44 = vld [vmem:[#allocation2 + $0xb8] sm:$0xff]  ;;  %874 = vst.msk [vmem:[#allocation2 + $0x170] sm:$0xff] %vm827_vm2, %v6492_v40  ;;  %875 = vst.msk [vmem:[#allocation2 + $0x178] sm:$0xff] %vm827_vm2, %v6493_v41  ;;  %v6495_v48 = vld [vmem:[%s6632_s28 + $0x188] sm:$0xff]  }
  0x37   : > { %5887 = vmatmul.mubr.msk.bf16.gmra.mrb[16].mxu0 %vm827_vm2, %v6433_v37  ;;  %v6463_v37 = vld [vmem:[%s6632_s28 + $0xc0] sm:$0xff]   ;;  %876 = vst.msk [vmem:[#allocation2 + $0x180] sm:$0xff] %vm827_vm2, %v6494_v47  ;;  %v6496_v51 = vld [vmem:[%s6632_s28 + $0x190] sm:$0xff]   ;;  %877 = vst.msk [vmem:[#allocation2 + $0x188] sm:$0xff] %vm827_vm2, %v6495_v48 }
  0x38   : > { %5890 = vmatprep.mubr.msk.bf16.mxu0 %vm827_vm2, %v6435_v39  ;;  %v6491_v39 = vld [vmem:[%s6632_s28 + $0x168] sm:$0xff]   ;;  %878 = vst.msk [vmem:[#allocation2 + $0x190] sm:$0xff] %vm827_vm2, %v6496_v51  ;;  %v6498_v54 = vld [vmem:[%s6632_s28 + $0x1a0] sm:$0xff]   ;;  %v6500_v60 = vld [vmem:[%s6632_s28 + $0x1b0] sm:$0xff]  }
  0x39   : > { %873 = vst.msk [vmem:[#allocation2 + $0x168] sm:$0xff] %vm827_vm2, %v6491_v39  ;;  %v6873_v55 = vld [vmem:[#allocation2 + $0xc8] sm:$0xff]  ;;  %880 = vst.msk [vmem:[#allocation2 + $0x1a0] sm:$0xff] %vm827_vm2, %v6498_v54  ;;  %v6501_v62 = vld [vmem:[%s6632_s28 + $0x1b8] sm:$0xff]  }
  0x3a   : > { %v6499_v56 = vld [vmem:[%s6632_s28 + $0x1a8] sm:$0xff]   ;;  %v6471_v63 = vld [vmem:[%s6632_s28 + $0xe0] sm:$0xff]   ;;  %882 = vst.msk [vmem:[#allocation2 + $0x1b0] sm:$0xff] %vm827_vm2, %v6500_v60  ;;  %883 = vst.msk [vmem:[#allocation2 + $0x1b8] sm:$0xff] %vm827_vm2, %v6501_v62 }
  0x3b   : > { %881 = vst.msk [vmem:[#allocation2 + $0x1a8] sm:$0xff] %vm827_vm2, %v6499_v56  ;;  %v6502_v2 = vld [vmem:[%s6632_s28 + $0x1c0] sm:$0xff]   ;;  %v6897_v5 = vld [vmem:[#allocation2 + $0xd8] sm:$0xff]  ;;  %v6473_v11 = vld [vmem:[%s6632_s28 + $0xe8] sm:$0xff]  }
  0x3c   : > { %884 = vst.msk [vmem:[#allocation2 + $0x1c0] sm:$0xff] %vm827_vm2, %v6502_v2  ;;  %v6505_v6 = vld [vmem:[%s6632_s28 + $0x1d8] sm:$0xff]   ;;  %v6902_v8 = vld [vmem:[#allocation2 + $0xe0] sm:$0xff]  ;;  %v6475_v13 = vld [vmem:[%s6632_s28 + $0xf0] sm:$0xff]  }
  0x3d   : > { %5757 = vmatmul.mubr.msk.bf16.gmra.mrb[16].mxu1 %vm827_vm2, %v6725_v49  ;;  %887 = vst.msk [vmem:[#allocation2 + $0x1d8] sm:$0xff] %vm827_vm2, %v6505_v6  ;;  %v6917_v14 = vld [vmem:[#allocation2 + $0xe8] sm:$0xff]  ;;  %v6920_v16 = vld [vmem:[#allocation2 + $0xf0] sm:$0xff]  ;;  %v6509_v18 = vld [vmem:[%s6632_s28 + $0x1f8] sm:$0xff]  }
  0x3e   : > { %5760 = vmatprep.mubr.msk.bf16.mxu1 %vm827_vm2, %v6730_v52  ;;  %v6477_v20 = vld [vmem:[%s6632_s28 + $0xf8] sm:$0xff]   ;;  %891 = vst.msk [vmem:[#allocation2 + $0x1f8] sm:$0xff] %vm827_vm2, %v6509_v18  ;;  %v6943_v23 = vld [vmem:[#allocation2 + $0x100] sm:$0xff]  ;;  %v6511_v25 = vld [vmem:[%s6940_s6 + $0x8] sm:$0xff]  }
  0x3f   : > { %5891 = vmatmul.mubr.msk.bf16.gmra.mrb[20].mxu0 %vm827_vm2, %v6437_v45  ;;  %v6465_v45 = vld [vmem:[%s6632_s28 + $0xc8] sm:$0xff]   ;;  %v6931_v21 = vld [vmem:[#allocation2 + $0xf8] sm:$0xff]  ;;  %925 = vst.msk [vmem:[#allocation2 + $0x208] sm:$0xff] %vm827_vm2, %v6511_v25  ;;  %v6958_v26 = vld [vmem:[#allocation2 + $0x110] sm:$0xff] }
  0x40   : > { %5894 = vmatprep.mubr.msk.bf16.mxu0 %vm827_vm2, %v6439_v46  ;;  %v6856_v46 = vld [vmem:[#allocation2 + $0xc0] sm:$0xff]  ;;  %v6968_v29 = vld [vmem:[#allocation2 + $0x118] sm:$0xff]  ;;  %v6513_v18 = vld [vmem:[%s6632_s28 + $0x108] sm:$0xff]  }
  0x42   : > { %v7076_v31 = vld [vmem:[#allocation2 + $0x1a8] sm:$0xff] }
  0x43   : > { %v7090_v35 = vld [vmem:[#allocation2 + $0x1c0] sm:$0xff] }
  0x44   : > { %v7126_v48 = vld [vmem:[#allocation2 + $0x1d8] sm:$0xff] }
  0x45   : > { %5761 = vmatmul.mubr.msk.bf16.gmra.mrb[20].mxu1 %vm827_vm2, %v6745_v57 }
  0x46   : > { %5764 = vmatprep.mubr.msk.bf16.mxu1 %vm827_vm2, %v6748_v59 }
  0x47   : > { %5895 = vmatmul.mubr.msk.bf16.gmra.mrb[24].mxu0 %vm827_vm2, %v6441_v50  ;;  %v6467_v50 = vld [vmem:[%s6632_s28 + $0xd0] sm:$0xff]  }
  0x48   : > { %5898 = vmatprep.mubr.msk.bf16.mxu0 %vm827_vm2, %v6443_v53  ;;  %v6497_v53 = vld [vmem:[%s6632_s28 + $0x198] sm:$0xff]  }
  0x49   : > { %879 = vst.msk [vmem:[#allocation2 + $0x198] sm:$0xff] %vm827_vm2, %v6497_v53 }
  0x4d   : > { %5765 = vmatmul.mubr.msk.bf16.gmra.mrb[24].mxu1 %vm827_vm2, %v6762_v0 }
  0x4e   : > { %5768 = vmatprep.mubr.msk.bf16.mxu1 %vm827_vm2, %v6765_v1 }
  0x4f   : > { %5899 = vmatmul.mubr.msk.bf16.gmra.mrb[28].mxu0 %vm827_vm2, %v6445_v58  ;;  %v6878_v58 = vld [vmem:[#allocation2 + $0xd0] sm:$0xff] }
  0x50   : > { %5902 = vmatprep.mubr.msk.bf16.mxu0 %vm827_vm2, %v6447_v61  ;;  %v6469_v61 = vld [vmem:[%s6632_s28 + $0xd8] sm:$0xff]  }
  0x55   : > { %5769 = vmatmul.mubr.msk.bf16.gmra.mrb[28].mxu1 %vm827_vm2, %v6780_v7 }
  0x56   : > { %5772 = vmatprep.mubr.msk.bf16.mxu1 %vm827_vm2, %v6785_v9 }
  0x57   : > { %5903 = vmatmul.mubr.msk.bf16.gmra.mrb[32].mxu0 %vm827_vm2, %v6449_v3  ;;  %v6503_v3 = vld [vmem:[%s6632_s28 + $0x1c8] sm:$0xff]  }
  0x58   : > { %5906 = vmatprep.mubr.msk.bf16.mxu0 %vm827_vm2, %v6451_v4  ;;  %v6504_v4 = vld [vmem:[%s6632_s28 + $0x1d0] sm:$0xff]   ;;  %885 = vst.msk [vmem:[#allocation2 + $0x1c8] sm:$0xff] %vm827_vm2, %v6503_v3 }
  0x59   : > { %886 = vst.msk [vmem:[#allocation2 + $0x1d0] sm:$0xff] %vm827_vm2, %v6504_v4  ;;  %v7169_v4 = vld [vmem:[#allocation2 + $0x1f8] sm:$0xff] }
  0x5d   : > { %5773 = vmatmul.mubr.msk.bf16.gmra.mrb[32].mxu1 %vm827_vm2, %v6798_v15 }
  0x5e   : > { %5776 = vmatprep.mubr.msk.bf16.mxu1 %vm827_vm2, %v6807_v19 }
  0x5f   : > { %5907 = vmatmul.mubr.msk.bf16.gmra.mrb[36].mxu0 %vm827_vm2, %v6453_v10  ;;  %v6506_v10 = vld [vmem:[%s6632_s28 + $0x1e0] sm:$0xff]   ;;  %v7106_v40 = vld [vmem:[#allocation2 + $0x1c8] sm:$0xff] }
  0x60   : > { %5910 = vmatprep.mubr.msk.bf16.mxu0 %vm827_vm2, %v6455_v12  ;;  %v6507_v12 = vld [vmem:[%s6632_s28 + $0x1e8] sm:$0xff]   ;;  %888 = vst.msk [vmem:[#allocation2 + $0x1e0] sm:$0xff] %vm827_vm2, %v6506_v10 }
  0x61   : > { %889 = vst.msk [vmem:[#allocation2 + $0x1e8] sm:$0xff] %vm827_vm2, %v6507_v12  ;;  %v7190_v12 = vld [vmem:[#allocation2 + $0x208] sm:$0xff] }
  0x65   : > { %5777 = vmatmul.mubr.msk.bf16.gmra.mrb[36].mxu1 %vm827_vm2, %v6828_v30 }
  0x66   : > { %5780 = vmatprep.mubr.msk.bf16.mxu1 %vm827_vm2, %v6832_v32 }
  0x67   : > { %5911 = vmatmul.mubr.msk.bf16.gmra.mrb[40].mxu0 %vm827_vm2, %v6457_v17  ;;  %v6508_v17 = vld [vmem:[%s6632_s28 + $0x1f0] sm:$0xff]   ;;  %v7130_v51 = vld [vmem:[#allocation2 + $0x1e0] sm:$0xff] }
  0x68   : > { %5914 = vmatprep.mubr.msk.bf16.mxu0 %vm827_vm2, %v6459_v22  ;;  %890 = vst.msk [vmem:[#allocation2 + $0x1f0] sm:$0xff] %vm827_vm2, %v6508_v17  ;;  %v6510_v22 = vld [vmem:[%s6940_s6] sm:$0xff]   ;;  %v7146_v56 = vld [vmem:[#allocation2 + $0x1e8] sm:$0xff] }
  0x69   : > { %924 = vst.msk [vmem:[#allocation2 + $0x200] sm:$0xff] %vm827_vm2, %v6510_v22 }
  0x6d   : > { %5781 = vmatmul.mubr.msk.bf16.gmra.mrb[40].mxu1 %vm827_vm2, %v6852_v44 }
  0x6e   : > { %5784 = vmatprep.mubr.msk.bf16.mxu1 %vm827_vm2, %v6856_v46 }
  0x6f   : > { %5915 = vmatmul.mubr.msk.bf16.gmra.mrb[44].mxu0 %vm827_vm2, %v6461_v33  ;;  %v7088_v33 = vld [vmem:[#allocation2 + $0x1b8] sm:$0xff]  ;;  %v7150_v60 = vld [vmem:[#allocation2 + $0x1f0] sm:$0xff] }
  0x70   : > { %5918 = vmatprep.mubr.msk.bf16.mxu0 %vm827_vm2, %v6463_v37  ;;  %v7174_v6 = vld [vmem:[#allocation2 + $0x200] sm:$0xff] }
  0x75   : > { %5785 = vmatmul.mubr.msk.bf16.gmra.mrb[44].mxu1 %vm827_vm2, %v6873_v55 }
  0x76   : > { %5788 = vmatprep.mubr.msk.bf16.mxu1 %vm827_vm2, %v6878_v58 }
  0x77   : > { %5919 = vmatmul.mubr.msk.bf16.gmra.mrb[48].mxu0 %vm827_vm2, %v6465_v45 }
  0x78   : > { %5922 = vmatprep.mubr.msk.bf16.mxu0 %vm827_vm2, %v6467_v50 }
  0x7d   : > { %5789 = vmatmul.mubr.msk.bf16.gmra.mrb[48].mxu1 %vm827_vm2, %v6897_v5 }
  0x7e   : > { %5792 = vmatprep.mubr.msk.bf16.mxu1 %vm827_vm2, %v6902_v8 }
  0x7f   : > { %5923 = vmatmul.mubr.msk.bf16.gmra.mrb[52].mxu0 %vm827_vm2, %v6469_v61  ;;  %v6542_v61 = vld [vmem:[%s6940_s6 + $0x10] sm:$0xff]  }
  0x80   : > { %5926 = vmatprep.mubr.msk.bf16.mxu0 %vm827_vm2, %v6471_v63  ;;  %v6543_v63 = vld [vmem:[%s6940_s6 + $0x18] sm:$0xff]   ;;  %926 = vst.msk [vmem:[#allocation2 + $0x210] sm:$0xff] %vm827_vm2, %v6542_v61 }
  0x81   : > { %927 = vst.msk [vmem:[#allocation2 + $0x218] sm:$0xff] %vm827_vm2, %v6543_v63  ;;  %v6519_v63 = vld [vmem:[%s6632_s28 + $0x138] sm:$0xff]  }
  0x85   : > { %5793 = vmatmul.mubr.msk.bf16.gmra.mrb[52].mxu1 %vm827_vm2, %v6917_v14 }
  0x86   : > { %5796 = vmatprep.mubr.msk.bf16.mxu1 %vm827_vm2, %v6920_v16 }
  0x87   : > { %5927 = vmatmul.mubr.msk.bf16.gmra.mrb[56].mxu0 %vm827_vm2, %v6473_v11 }
  0x88   : > { %5930 = vmatprep.mubr.msk.bf16.mxu0 %vm827_vm2, %v6475_v13  ;;  %v6512_v13 = vld [vmem:[%s6632_s28 + $0x100] sm:$0xff]  }
  0x8d   : > { %5797 = vmatmul.mubr.msk.bf16.gmra.mrb[56].mxu1 %vm827_vm2, %v6931_v21 }
  0x8e   : > { %5800 = vmatprep.mubr.msk.bf16.mxu1 %vm827_vm2, %v6943_v23 }
  0x8f   : > { %5931 = vmatmul.mubr.msk.bf16.gmra.mrb[60].mxu0 %vm827_vm2, %v6477_v20 }
  0x90   : > { %6000 = vmatprep.mubr.msk.bf16.mxu0 %vm827_vm2, %v6659_v24  ;;  %v6952_v24 = vld [vmem:[#allocation2 + $0x108] sm:$0xff] }
  0x95   : > { %5801 = vmatmul.mubr.msk.bf16.gmra.mrb[60].mxu1 %vm827_vm2, %v6952_v24 }
  0x96   : > { %5804 = vmatprep.mubr.msk.bf16.mxu1 %vm827_vm2, %v6958_v26 }
  0x97   : > { %6001 = vmatmul.mubr.msk.bf16.vlgmr.msra.gmra.mrb[0].mxu0 %vm827_vm2, %v6669_v27  ;;  %v6970_v27 = vld [vmem:[#allocation2 + $0x120] sm:$0xff] }
  0x98   : > { %6004 = vmatprep.mubr.msk.bf16.mxu0 %vm827_vm2, %v6671_v28  ;;  %v6980_v28 = vld [vmem:[#allocation2 + $0x128] sm:$0xff] }
  0x9d   : > { %5805 = vmatmul.mubr.msk.bf16.gmra.mrb[64].mxu1 %vm827_vm2, %v6968_v29 }
  0x9e   : > { %5808 = vmatprep.mubr.msk.bf16.mxu1 %vm827_vm2, %v6970_v27 }
  0x9f   : > { %6005 = vmatmul.mubr.msk.bf16.gmra.mrb[4].mxu0 %vm827_vm2, %v6687_v34  ;;  %v6982_v34 = vld [vmem:[#allocation2 + $0x130] sm:$0xff] }
  0xa0   : > { %6008 = vmatprep.mubr.msk.bf16.mxu0 %vm827_vm2, %v6691_v36  ;;  %v6992_v36 = vld [vmem:[#allocation2 + $0x138] sm:$0xff] }
  0xa5   : > { %5809 = vmatmul.mubr.msk.bf16.gmra.mrb[68].mxu1 %vm827_vm2, %v6980_v28 }
  0xa6   : > { %5812 = vmatprep.mubr.msk.bf16.mxu1 %vm827_vm2, %v6982_v34 }
  0xa7   : > { %6009 = vmatmul.mubr.msk.bf16.gmra.mrb[8].mxu0 %vm827_vm2, %v6707_v42  ;;  %v6994_v42 = vld [vmem:[#allocation2 + $0x140] sm:$0xff] }
  0xa8   : > { %6012 = vmatprep.mubr.msk.bf16.mxu0 %vm827_vm2, %v6709_v43  ;;  %v7004_v43 = vld [vmem:[#allocation2 + $0x148] sm:$0xff] }
  0xad   : > { %5813 = vmatmul.mubr.msk.bf16.gmra.mrb[72].mxu1 %vm827_vm2, %v6992_v36 }
  0xae   : > { %5816 = vmatprep.mubr.msk.bf16.mxu1 %vm827_vm2, %v6994_v42 }
  0xaf   : > { %6013 = vmatmul.mubr.msk.bf16.gmra.mrb[12].mxu0 %vm827_vm2, %v6725_v49  ;;  %v7006_v49 = vld [vmem:[#allocation2 + $0x150] sm:$0xff] }
  0xb0   : > { %6016 = vmatprep.mubr.msk.bf16.mxu0 %vm827_vm2, %v6730_v52  ;;  %v7016_v52 = vld [vmem:[#allocation2 + $0x158] sm:$0xff] }
  0xb5   : > { %5817 = vmatmul.mubr.msk.bf16.gmra.mrb[76].mxu1 %vm827_vm2, %v7004_v43 }
  0xb6   : > { %5820 = vmatprep.mubr.msk.bf16.mxu1 %vm827_vm2, %v7006_v49 }
  0xb7   : > { %6017 = vmatmul.mubr.msk.bf16.gmra.mrb[16].mxu0 %vm827_vm2, %v6745_v57  ;;  %v7018_v57 = vld [vmem:[#allocation2 + $0x160] sm:$0xff] }
  0xb8   : > { %6020 = vmatprep.mubr.msk.bf16.mxu0 %vm827_vm2, %v6748_v59  ;;  %v7028_v59 = vld [vmem:[#allocation2 + $0x168] sm:$0xff] }
  0xbd   : > { %5821 = vmatmul.mubr.msk.bf16.gmra.mrb[80].mxu1 %vm827_vm2, %v7016_v52 }
  0xbe   : > { %5824 = vmatprep.mubr.msk.bf16.mxu1 %vm827_vm2, %v7018_v57 }
  0xbf   : > { %6021 = vmatmul.mubr.msk.bf16.gmra.mrb[20].mxu0 %vm827_vm2, %v6762_v0  ;;  %v7030_v0 = vld [vmem:[#allocation2 + $0x170] sm:$0xff] }
  0xc0   : > { %6024 = vmatprep.mubr.msk.bf16.mxu0 %vm827_vm2, %v6765_v1  ;;  %v7040_v1 = vld [vmem:[#allocation2 + $0x178] sm:$0xff] }
  0xc5   : > { %5825 = vmatmul.mubr.msk.bf16.gmra.mrb[84].mxu1 %vm827_vm2, %v7028_v59 }
  0xc6   : > { %5828 = vmatprep.mubr.msk.bf16.mxu1 %vm827_vm2, %v7030_v0 }
  0xc7   : > { %6025 = vmatmul.mubr.msk.bf16.gmra.mrb[24].mxu0 %vm827_vm2, %v6780_v7  ;;  %v7042_v7 = vld [vmem:[#allocation2 + $0x180] sm:$0xff] }
  0xc8   : > { %6028 = vmatprep.mubr.msk.bf16.mxu0 %vm827_vm2, %v6785_v9  ;;  %v7052_v9 = vld [vmem:[#allocation2 + $0x188] sm:$0xff] }
  0xcd   : > { %5829 = vmatmul.mubr.msk.bf16.gmra.mrb[88].mxu1 %vm827_vm2, %v7040_v1 }
  0xce   : > { %5832 = vmatprep.mubr.msk.bf16.mxu1 %vm827_vm2, %v7042_v7 }
  0xcf   : > { %6029 = vmatmul.mubr.msk.bf16.gmra.mrb[28].mxu0 %vm827_vm2, %v6798_v15  ;;  %v7054_v15 = vld [vmem:[#allocation2 + $0x190] sm:$0xff] }
  0xd0   : > { %6032 = vmatprep.mubr.msk.bf16.mxu0 %vm827_vm2, %v6807_v19  ;;  %v7064_v19 = vld [vmem:[#allocation2 + $0x198] sm:$0xff] }
  0xd5   : > { %5833 = vmatmul.mubr.msk.bf16.gmra.mrb[92].mxu1 %vm827_vm2, %v7052_v9 }
  0xd6   : > { %5836 = vmatprep.mubr.msk.bf16.mxu1 %vm827_vm2, %v7054_v15 }
  0xd7   : > { %6033 = vmatmul.mubr.msk.bf16.gmra.mrb[32].mxu0 %vm827_vm2, %v6828_v30  ;;  %v7066_v30 = vld [vmem:[#allocation2 + $0x1a0] sm:$0xff] }
  0xd8   : > { %6036 = vmatprep.mubr.msk.bf16.mxu0 %vm827_vm2, %v6832_v32  ;;  %v7078_v32 = vld [vmem:[#allocation2 + $0x1b0] sm:$0xff] }
  0xdd   : > { %5837 = vmatmul.mubr.msk.bf16.gmra.mrb[96].mxu1 %vm827_vm2, %v7064_v19 }
  0xde   : > { %5840 = vmatprep.mubr.msk.bf16.mxu1 %vm827_vm2, %v7066_v30 }
  0xdf   : > { %6037 = vmatmul.mubr.msk.bf16.gmra.mrb[36].mxu0 %vm827_vm2, %v6852_v44  ;;  %v7110_v44 = vld [vmem:[#allocation2 + $0x1d0] sm:$0xff] }
  0xe0   : > { %6040 = vmatprep.mubr.msk.bf16.mxu0 %vm827_vm2, %v6856_v46 }
  0xe5   : > { %5841 = vmatmul.mubr.msk.bf16.gmra.mrb[100].mxu1 %vm827_vm2, %v7076_v31 }
  0xe6   : > { %5844 = vmatprep.mubr.msk.bf16.mxu1 %vm827_vm2, %v7078_v32 }
  0xe7   : > { %6041 = vmatmul.mubr.msk.bf16.gmra.mrb[40].mxu0 %vm827_vm2, %v6873_v55 }
  0xe8   : > { %6044 = vmatprep.mubr.msk.bf16.mxu0 %vm827_vm2, %v6878_v58 }
  0xed   : > { %5845 = vmatmul.mubr.msk.bf16.gmra.mrb[104].mxu1 %vm827_vm2, %v7088_v33 }
  0xee   : > { %5848 = vmatprep.mubr.msk.bf16.mxu1 %vm827_vm2, %v7090_v35 }
  0xef   : > { %6045 = vmatmul.mubr.msk.bf16.gmra.mrb[44].mxu0 %vm827_vm2, %v6897_v5 }
  0xf0   : > { %6048 = vmatprep.mubr.msk.bf16.mxu0 %vm827_vm2, %v6902_v8  ;;  %v7096_v37 = vpop.f32.mrb[0].mxu1 }
  0xf1   : > { %v7100_v38 = vpop.f32.mrb[1].mxu1 }
  0xf2   : > { %v7104_v39 = vpop.f32.mrb[2].mxu1 }
  0xf3   : > { %v7108_v41 = vpop.f32.mrb[3].mxu1 }
  0xf5   : > { %5849 = vmatmul.mubr.msk.bf16.gmra.mrb[108].mxu1 %vm827_vm2, %v7106_v40 }
  0xf6   : > { %5852 = vmatprep.mubr.msk.bf16.mxu1 %vm827_vm2, %v7110_v44 }
  0xf7   : > { %6049 = vmatmul.mubr.msk.bf16.gmra.mrb[48].mxu0 %vm827_vm2, %v6917_v14 }
  0xf8   : > { %6052 = vmatprep.mubr.msk.bf16.mxu0 %vm827_vm2, %v6920_v16  ;;  %v7116_v45 = vpop.f32.mrb[4].mxu1 }
  0xf9   : > { %v7120_v46 = vpop.f32.mrb[5].mxu1 }
  0xfa   : > { %v7124_v47 = vpop.f32.mrb[6].mxu1 }
  0xfb   : > { %v7128_v50 = vpop.f32.mrb[7].mxu1 }
  0xfd   : > { %5853 = vmatmul.mubr.msk.bf16.gmra.mrb[112].mxu1 %vm827_vm2, %v7126_v48 }
  0xfe   : > { %5856 = vmatprep.mubr.msk.bf16.mxu1 %vm827_vm2, %v7130_v51 }
  0xff   : > { %6053 = vmatmul.mubr.msk.bf16.gmra.mrb[52].mxu0 %vm827_vm2, %v6931_v21  ;;  %v6514_v21 = vld [vmem:[%s6632_s28 + $0x110] sm:$0xff]  }
 0x100   : > { %6056 = vmatprep.mubr.msk.bf16.mxu0 %vm827_vm2, %v6943_v23  ;;  %v7136_v53 = vpop.f32.mrb[8].mxu1 }
 0x101   : > { %v7140_v54 = vpop.f32.mrb[9].mxu1 }
 0x102   : > { %v7144_v55 = vpop.f32.mrb[10].mxu1 }
 0x103   : > { %v7148_v58 = vpop.f32.mrb[11].mxu1 }
 0x105   : > { %5857 = vmatmul.mubr.msk.bf16.gmra.mrb[116].mxu1 %vm827_vm2, %v7146_v56 }
 0x106   : > { %5860 = vmatprep.mubr.msk.bf16.mxu1 %vm827_vm2, %v7150_v60 }
 0x107   : > { %6057 = vmatmul.mubr.msk.bf16.gmra.mrb[56].mxu0 %vm827_vm2, %v6952_v24  ;;  %v6515_v24 = vld [vmem:[%s6632_s28 + $0x118] sm:$0xff]  }
 0x108   : > { %6060 = vmatprep.mubr.msk.bf16.mxu0 %vm827_vm2, %v6958_v26  ;;  %v7157_v62 = vpop.f32.mrb[12].mxu1 }
 0x109   : > { %v7162_v2 = vpop.f32.mrb[13].mxu1 }
 0x10a   : > { %v7167_v3 = vpop.f32.mrb[14].mxu1 }
 0x10b   : > { %v7172_v5 = vpop.f32.mrb[15].mxu1 }
 0x10d   : > { %5861 = vmatmul.mubr.msk.bf16.gmra.mrb[120].mxu1 %vm827_vm2, %v7169_v4 }
 0x10e   : > { %5864 = vmatprep.mubr.msk.bf16.mxu1 %vm827_vm2, %v7174_v6 }
 0x10f   : > { %6061 = vmatmul.mubr.msk.bf16.gmra.mrb[60].mxu0 %vm827_vm2, %v6968_v29  ;;  %v6516_v29 = vld [vmem:[%s6632_s28 + $0x120] sm:$0xff]  }
 0x110   : > { %6064 = vmatprep.mubr.msk.bf16.mxu0 %vm827_vm2, %v6970_v27  ;;  %v7180_v8 = vpop.f32.mrb[16].mxu1 }
 0x111   : > { %v7184_v10 = vpop.f32.mrb[17].mxu1 }
 0x112   : > { %v7188_v11 = vpop.f32.mrb[18].mxu1 }
 0x113   : > { %v7193_v14 = vpop.f32.mrb[19].mxu1 }
 0x115   : > { %5865 = vmatmul.mubr.msk.bf16.gmra.mrb[124].mxu1 %vm827_vm2, %v7190_v12 }
 0x116   : > { %5934 = vmatprep.mubr.msk.bf16.mxu1 %vm827_vm2, %v6512_v13  ;;  %v6520_v13 = vld [vmem:[%s6632_s28 + $0x140] sm:$0xff]  }
 0x117   : > { %6065 = vmatmul.mubr.msk.bf16.gmra.mrb[64].mxu0 %vm827_vm2, %v6980_v28 }
 0x118   : > { %6068 = vmatprep.mubr.msk.bf16.mxu0 %vm827_vm2, %v6982_v34  ;;  %v7198_v16 = vpop.f32.mrb[20].mxu1 }
 0x119   : > { %v7202_v17 = vpop.f32.mrb[21].mxu1 }
 0x11a   : > { %v7207_v20 = vpop.f32.mrb[22].mxu1 }
 0x11b   : > { %v7210_v22 = vpop.f32.mrb[23].mxu1 }
 0x11d   : > { %5935 = vmatmul.mubr.msk.bf16.vlgmr.msra.gmra.mrb[64].mxu1 %vm827_vm2, %v6513_v18 }
 0x11e   : > { %5938 = vmatprep.mubr.msk.bf16.mxu1 %vm827_vm2, %v6514_v21 }
 0x11f   : > { %6069 = vmatmul.mubr.msk.bf16.gmra.mrb[68].mxu0 %vm827_vm2, %v6992_v36  ;;  %v6517_v36 = vld [vmem:[%s6632_s28 + $0x128] sm:$0xff]  }
 0x120   : > { %6072 = vmatprep.mubr.msk.bf16.mxu0 %vm827_vm2, %v6994_v42  ;;  %v7214_v23 = vpop.f32.mrb[24].mxu1 }
 0x121   : > { %v7218_v25 = vpop.f32.mrb[25].mxu1 }
 0x122   : > { %v7223_v26 = vpop.f32.mrb[26].mxu1 }
 0x123   : > { %v7226_v27 = vpop.f32.mrb[27].mxu1 }
 0x125   : > { %5939 = vmatmul.mubr.msk.bf16.gmra.mrb[68].mxu1 %vm827_vm2, %v6515_v24  ;;  %v6521_v24 = vld [vmem:[%s6632_s28 + $0x148] sm:$0xff]  }
 0x126   : > { %5942 = vmatprep.mubr.msk.bf16.mxu1 %vm827_vm2, %v6516_v29  ;;  %v6522_v29 = vld [vmem:[%s6632_s28 + $0x150] sm:$0xff]  }
 0x127   : > { %6073 = vmatmul.mubr.msk.bf16.gmra.mrb[72].mxu0 %vm827_vm2, %v7004_v43  ;;  %v6518_v43 = vld [vmem:[%s6632_s28 + $0x130] sm:$0xff]  }
 0x128   : > { %6076 = vmatprep.mubr.msk.bf16.mxu0 %vm827_vm2, %v7006_v49  ;;  %v7230_v28 = vpop.f32.mrb[28].mxu1 }
 0x129   : > { %v7234_v34 = vpop.f32.mrb[29].mxu1 }
 0x12a   : > { %v7239_v42 = vpop.f32.mrb[30].mxu1 }
 0x12b   : > { %v7242_v49 = vpop.f32.mrb[31].mxu1 }
 0x12d   : > { %5943 = vmatmul.mubr.msk.bf16.gmra.mrb[72].mxu1 %vm827_vm2, %v6517_v36 }
 0x12e   : > { %5946 = vmatprep.mubr.msk.bf16.mxu1 %vm827_vm2, %v6518_v43 }
 0x12f   : > { %6077 = vmatmul.mubr.msk.bf16.gmra.mrb[76].mxu0 %vm827_vm2, %v7016_v52 }
 0x130   : > { %6080 = vmatprep.mubr.msk.bf16.mxu0 %vm827_vm2, %v7018_v57  ;;  %v7246_v61 = vpop.f32.mrb[32].mxu1 }
 0x131   : > { %v7250_v52 = vpop.f32.mrb[33].mxu1 }
 0x132   : > { %v7255_v57 = vpop.f32.mrb[34].mxu1 }
 0x133   : > { %v7258_v18 = vpop.f32.mrb[35].mxu1 }
 0x135   : > { %5947 = vmatmul.mubr.msk.bf16.gmra.mrb[76].mxu1 %vm827_vm2, %v6519_v63  ;;  %v6523_v63 = vld [vmem:[%s6632_s28 + $0x158] sm:$0xff]  }
 0x136   : > { %5950 = vmatprep.mubr.msk.bf16.mxu1 %vm827_vm2, %v6520_v13  ;;  %v6524_v13 = vld [vmem:[%s6632_s28 + $0x160] sm:$0xff]  }
 0x137   : > { %6081 = vmatmul.mubr.msk.bf16.gmra.mrb[80].mxu0 %vm827_vm2, %v7028_v59 }
 0x138   : > { %6084 = vmatprep.mubr.msk.bf16.mxu0 %vm827_vm2, %v7030_v0  ;;  %v7262_v21 = vpop.f32.mrb[36].mxu1 }
 0x139   : > { %v7266_v59 = vpop.f32.mrb[37].mxu1 }
 0x13a   : > { %v7271_v0 = vpop.f32.mrb[38].mxu1 }
 0x13b   : > { %v7274_v36 = vpop.f32.mrb[39].mxu1 }
 0x13c   : > { %7883 = vst [vmem:[#allocation3_spill] sm:$0xff] %v7274_v36 }
 0x13d   : > { %5951 = vmatmul.mubr.msk.bf16.gmra.mrb[80].mxu1 %vm827_vm2, %v6521_v24 }
 0x13e   : > { %5954 = vmatprep.mubr.msk.bf16.mxu1 %vm827_vm2, %v6522_v29  ;;  %v6525_v29 = vld [vmem:[%s6632_s28 + $0x168] sm:$0xff]  }
 0x13f   : > { %6085 = vmatmul.mubr.msk.bf16.gmra.mrb[84].mxu0 %vm827_vm2, %v7040_v1 }
 0x140   : > { %6088 = vmatprep.mubr.msk.bf16.mxu0 %vm827_vm2, %v7042_v7  ;;  %v7278_v43 = vpop.f32.mrb[40].mxu1 }
 0x141   : > { %v7282_v1 = vpop.f32.mrb[41].mxu1 }
 0x142   : > { %v7287_v7 = vpop.f32.mrb[42].mxu1 }
 0x143   : > { %7884 = vst [vmem:[#allocation4_spill] sm:$0xff] %v7287_v7  ;;  %v7290_v36 = vpop.f32.mrb[43].mxu1 }
 0x144   : > { %7885 = vst [vmem:[#allocation5_spill] sm:$0xff] %v7290_v36  ;;  %v6526_v36 = vld [vmem:[%s6632_s28 + $0x170] sm:$0xff]  }
 0x145   : > { %5955 = vmatmul.mubr.msk.bf16.gmra.mrb[84].mxu1 %vm827_vm2, %v6523_v63 }
 0x146   : > { %5958 = vmatprep.mubr.msk.bf16.mxu1 %vm827_vm2, %v6524_v13  ;;  %v6527_v13 = vld [vmem:[%s6632_s28 + $0x178] sm:$0xff]  }
 0x147   : > { %6089 = vmatmul.mubr.msk.bf16.gmra.mrb[88].mxu0 %vm827_vm2, %v7052_v9 }
 0x148   : > { %6092 = vmatprep.mubr.msk.bf16.mxu0 %vm827_vm2, %v7054_v15  ;;  %v7294_v24 = vpop.f32.mrb[44].mxu1 }
 0x149   : > { %v7298_v9 = vpop.f32.mrb[45].mxu1 }
 0x14a   : > { %v7303_v15 = vpop.f32.mrb[46].mxu1 }
 0x14b   : > { %7886 = vst [vmem:[#allocation6_spill] sm:$0xff] %v7303_v15  ;;  %v7306_v7 = vpop.f32.mrb[47].mxu1 }
 0x14c   : > { %7887 = vst [vmem:[#allocation7_spill] sm:$0xff] %v7306_v7  ;;  %v6528_v7 = vld [vmem:[%s6632_s28 + $0x180] sm:$0xff]  }
 0x14d   : > { %5959 = vmatmul.mubr.msk.bf16.gmra.mrb[88].mxu1 %vm827_vm2, %v6525_v29  ;;  %v6529_v29 = vld [vmem:[%s6632_s28 + $0x188] sm:$0xff]  }
 0x14e   : > { %5962 = vmatprep.mubr.msk.bf16.mxu1 %vm827_vm2, %v6526_v36 }
 0x14f   : > { %6093 = vmatmul.mubr.msk.bf16.gmra.mrb[92].mxu0 %vm827_vm2, %v7064_v19 }
 0x150   : > { %6096 = vmatprep.mubr.msk.bf16.mxu0 %vm827_vm2, %v7066_v30  ;;  %v7310_v63 = vpop.f32.mrb[48].mxu1 }
 0x151   : > { %v7314_v19 = vpop.f32.mrb[49].mxu1 }
 0x152   : > { %7888 = vst [vmem:[#allocation8_spill] sm:$0xff] %v7314_v19  ;;  %v7319_v30 = vpop.f32.mrb[50].mxu1 }
 0x153   : > { %7889 = vst [vmem:[#allocation9_spill] sm:$0xff] %v7319_v30  ;;  %v7322_v15 = vpop.f32.mrb[51].mxu1 }
 0x154   : > { %7890 = vst [vmem:[#allocation10_spill] sm:$0xff] %v7322_v15  ;;  %v6530_v15 = vld [vmem:[%s6632_s28 + $0x190] sm:$0xff]  }
 0x155   : > { %5963 = vmatmul.mubr.msk.bf16.gmra.mrb[92].mxu1 %vm827_vm2, %v6527_v13  ;;  %v6531_v13 = vld [vmem:[%s6632_s28 + $0x198] sm:$0xff]  }
 0x156   : > { %5966 = vmatprep.mubr.msk.bf16.mxu1 %vm827_vm2, %v6528_v7 }
 0x157   : > { %6097 = vmatmul.mubr.msk.bf16.gmra.mrb[96].mxu0 %vm827_vm2, %v7076_v31 }
 0x158   : > { %6100 = vmatprep.mubr.msk.bf16.mxu0 %vm827_vm2, %v7078_v32  ;;  %v7326_v36 = vpop.f32.mrb[52].mxu1 }
 0x159   : > { %7891 = vst [vmem:[#allocation11_spill] sm:$0xff] %v7326_v36  ;;  %v7330_v31 = vpop.f32.mrb[53].mxu1 }
 0x15a   : > { %7892 = vst [vmem:[#allocation12_spill] sm:$0xff] %v7330_v31  ;;  %v7335_v32 = vpop.f32.mrb[54].mxu1 }
 0x15b   : > { %7893 = vst [vmem:[#allocation13_spill] sm:$0xff] %v7335_v32  ;;  %v7338_v30 = vpop.f32.mrb[55].mxu1  ;;  %v6532_v32 = vld [vmem:[%s6632_s28 + $0x1a0] sm:$0xff]  }
 0x15c   : > { %7894 = vst [vmem:[#allocation14_spill] sm:$0xff] %v7338_v30 }
 0x15d   : > { %5967 = vmatmul.mubr.msk.bf16.gmra.mrb[96].mxu1 %vm827_vm2, %v6529_v29 }
 0x15e   : > { %5970 = vmatprep.mubr.msk.bf16.mxu1 %vm827_vm2, %v6530_v15  ;;  %v7359_v15 = vld [vmem:[%s7881_s3] ss:$0 sm:$0xff] }
 0x15f   : > { %6101 = vmatmul.mubr.msk.bf16.gmra.mrb[100].mxu0 %vm827_vm2, %v7088_v33 }
 0x160   : > { %6104 = vmatprep.mubr.msk.bf16.mxu0 %vm827_vm2, %v7090_v35  ;;  %v7342_v7 = vpop.f32.mrb[56].mxu1 }
 0x161   : > { %7895 = vst [vmem:[#allocation15_spill] sm:$0xff] %v7342_v7  ;;  %v7346_v33 = vpop.f32.mrb[57].mxu1 }
 0x162   : > { %7896 = vst [vmem:[#allocation16_spill] sm:$0xff] %v7346_v33  ;;  %v7351_v35 = vpop.f32.mrb[58].mxu1 }
 0x163   : > { %7897 = vst [vmem:[#allocation17_spill] sm:$0xff] %v7351_v35  ;;  %v7354_v31 = vpop.f32.mrb[59].mxu1 }
 0x164   : > { %7898 = vst [vmem:[#allocation18_spill] sm:$0xff] %v7354_v31 }
 0x165   : > { %5971 = vmatmul.mubr.msk.bf16.gmra.mrb[100].mxu1 %vm827_vm2, %v6531_v13 }
 0x166   : > { %5974 = vmatprep.mubr.msk.bf16.mxu1 %vm827_vm2, %v6532_v32  ;;  %v6533_v32 = vld [vmem:[%s6632_s28 + $0x1a8] sm:$0xff]  }
 0x167   : > { %6105 = vmatmul.mubr.msk.bf16.gmra.mrb[104].mxu0 %vm827_vm2, %v7106_v40 }
 0x168   : > { %6108 = vmatprep.mubr.msk.bf16.mxu0 %vm827_vm2, %v7110_v44 }
 0x16a   : > { %v6002_v30 = vpop.f32.mrb[0].mxu0 }
 0x16b   : > { %v6130_v40 = vadd.f32 %v6002_v30, %v7096_v37  ;;  %v3240_v29 = vpop.f32.mrb[1].mxu0  ;;  %v7369_v37 = vpop.f32.mrb[60].mxu1 }
 0x16c   : > { %v6131_v33 = vadd.f32 %v3240_v29, %v7100_v38  ;;  %v6003_v44 = vpop.f32.mrb[2].mxu0  ;;  %v7381_v38 = vpop.f32.mrb[61].mxu1 }
 0x16d   : > { %v3888_v35 = vadd.f32 %v6130_v40, %v7359_v15  ;;  %v6132_v31 = vadd.f32 %v6003_v44, %v7104_v39  ;;  %v3243_v7 = vpop.f32.mrb[3].mxu0  ;;  %7899 = vst [vmem:[#allocation19_spill] sm:$0xff] %v7381_v38  ;;  %5975 = vmatmul.mubr.msk.bf16.gmra.mrb[104].mxu1 %vm827_vm2, %v6533_v32 }
 0x16e   : > { %v3886_v36 = vadd.f32 %v6131_v33, %v7359_v15  ;;  %v6133_v19 = vadd.f32 %v3243_v7, %v7108_v41  ;;  %v6534_v33 = vld [vmem:[%s6632_s28 + $0x1b0] sm:$0xff]  }
 0x16f   : > { %v4016_v30 = vmax.f32 %v3888_v35, 0.0  ;;  %v3889_v13 = vadd.f32 %v6132_v31, %v7359_v15  ;;  %6109 = vmatmul.mubr.msk.bf16.gmra.mrb[108].mxu0 %vm827_vm2, %v7126_v48  ;;  %v7387_v48 = vpop.f32.mrb[62].mxu1  ;;  %5978 = vmatprep.mubr.msk.bf16.mxu1 %vm827_vm2, %v6534_v33 }
 0x170   : > { %v4014_v39 = vmax.f32 %v3886_v36, 0.0  ;;  %v3887_v41 = vadd.f32 %v6133_v19, %v7359_v15  ;;  %6112 = vmatprep.mubr.msk.bf16.mxu0 %vm827_vm2, %v7130_v51  ;;  %v7390_v40 = vpop.f32.mrb[63].mxu1 }
 0x171   : > { %v5417_v31 = vpack.c.bf16 %v4016_v30, %v4016_v30  ;;  %v4017_v7 = vmax.f32 %v3889_v13, 0.0 }
 0x172   : > { %v5415_v35 = vpack.c.bf16 %v4014_v39, %v4014_v39  ;;  %v4015_v29 = vmax.f32 %v3887_v41, 0.0  ;;  %v6006_v44 = vpop.f32.mrb[4].mxu0 }
 0x173   : > { %4657 = vst.msk [vmem:[%s7379_s11 + $0x8] sm:$0xf] %vm4654_vm3, %v5417_v31  ;;  %v5418_v36 = vpack.c.bf16 %v4017_v7, %v4017_v7  ;;  %v6134_v19 = vadd.f32 %v6006_v44, %v7116_v45  ;;  %v3256_v38 = vpop.f32.mrb[5].mxu0  ;;  %v6536_v44 = vld [vmem:[%s6632_s28 + $0x1c0] sm:$0xff]  }
 0x174   : > { %4655 = vst.msk [vmem:[%s7379_s11] sm:$0xf] %vm4654_vm3, %v5415_v35  ;;  %v5416_v51 = vpack.c.bf16 %v4015_v29, %v4015_v29  ;;  %v6135_v30 = vadd.f32 %v3256_v38, %v7120_v46  ;;  %v6007_v13 = vpop.f32.mrb[6].mxu0  ;;  %v6535_v35 = vld [vmem:[%s6632_s28 + $0x1b8] sm:$0xff]  }
 0x175   : > { %4658 = vst.msk [vmem:[%s7379_s11 + $0xc] sm:$0xf] %vm4654_vm3, %v5418_v36  ;;  %v3892_v39 = vadd.f32 %v6134_v19, %v7359_v15  ;;  %v6136_v41 = vadd.f32 %v6007_v13, %v7124_v47  ;;  %v3259_v31 = vpop.f32.mrb[7].mxu0  ;;  %5979 = vmatmul.mubr.msk.bf16.gmra.mrb[108].mxu1 %vm827_vm2, %v6535_v35 }
 0x176   : > { %4656 = vst.msk [vmem:[%s7379_s11 + $0x4] sm:$0xf] %vm4654_vm3, %v5416_v51  ;;  %v3890_v45 = vadd.f32 %v6135_v30, %v7359_v15  ;;  %v6137_v32 = vadd.f32 %v3259_v31, %v7128_v50  ;;  %5982 = vmatprep.mubr.msk.bf16.mxu1 %vm827_vm2, %v6536_v44 }
 0x177   : > { %v4020_v7 = vmax.f32 %v3892_v39, 0.0  ;;  %v3893_v46 = vadd.f32 %v6136_v41, %v7359_v15  ;;  %6113 = vmatmul.mubr.msk.bf16.gmra.mrb[112].mxu0 %vm827_vm2, %v7146_v56 }
 0x178   : > { %v4018_v38 = vmax.f32 %v3890_v45, 0.0  ;;  %v3891_v47 = vadd.f32 %v6137_v32, %v7359_v15  ;;  %6116 = vmatprep.mubr.msk.bf16.mxu0 %vm827_vm2, %v7150_v60 }
 0x179   : > { %v5421_v33 = vpack.c.bf16 %v4020_v7, %v4020_v7  ;;  %v4021_v29 = vmax.f32 %v3893_v46, 0.0 }
 0x17a   : > { %v5419_v36 = vpack.c.bf16 %v4018_v38, %v4018_v38  ;;  %v4019_v50 = vmax.f32 %v3891_v47, 0.0  ;;  %v6010_v19 = vpop.f32.mrb[8].mxu0  ;;  %v6537_v38 = vld [vmem:[%s6632_s28 + $0x1c8] sm:$0xff]  }
 0x17b   : > { %4661 = vst.msk [vmem:[%s7379_s11 + $0x18] sm:$0xf] %vm4654_vm3, %v5421_v33  ;;  %v5422_v51 = vpack.c.bf16 %v4021_v29, %v4021_v29  ;;  %v6138_v56 = vadd.f32 %v6010_v19, %v7136_v53  ;;  %v3272_v30 = vpop.f32.mrb[9].mxu0  ;;  %v6538_v33 = vld [vmem:[%s6632_s28 + $0x1d0] sm:$0xff]  }
 0x17c   : > { %4659 = vst.msk [vmem:[%s7379_s11 + $0x10] sm:$0xf] %vm4654_vm3, %v5419_v36  ;;  %v5420_v13 = vpack.c.bf16 %v4019_v50, %v4019_v50  ;;  %v6139_v60 = vadd.f32 %v3272_v30, %v7140_v54  ;;  %v6011_v39 = vpop.f32.mrb[10].mxu0 }
 0x17d   : > { %4662 = vst.msk [vmem:[%s7379_s11 + $0x1c] sm:$0xf] %vm4654_vm3, %v5422_v51  ;;  %v3896_v41 = vadd.f32 %v6138_v56, %v7359_v15  ;;  %v6140_v31 = vadd.f32 %v6011_v39, %v7144_v55  ;;  %v3275_v45 = vpop.f32.mrb[11].mxu0  ;;  %5983 = vmatmul.mubr.msk.bf16.gmra.mrb[112].mxu1 %vm827_vm2, %v6537_v38 }
 0x17e   : > { %4660 = vst.msk [vmem:[%s7379_s11 + $0x14] sm:$0xf] %vm4654_vm3, %v5420_v13  ;;  %v3894_v53 = vadd.f32 %v6139_v60, %v7359_v15  ;;  %v6141_v32 = vadd.f32 %v3275_v45, %v7148_v58  ;;  %5986 = vmatprep.mubr.msk.bf16.mxu1 %vm827_vm2, %v6538_v33  ;;  %v6539_v45 = vld [vmem:[%s6632_s28 + $0x1d8] sm:$0xff]  }
 0x17f   : > { %v4024_v7 = vmax.f32 %v3896_v41, 0.0  ;;  %v3897_v54 = vadd.f32 %v6140_v31, %v7359_v15  ;;  %6117 = vmatmul.mubr.msk.bf16.gmra.mrb[116].mxu0 %vm827_vm2, %v7169_v4 }
 0x180   : > { %v4022_v46 = vmax.f32 %v3894_v53, 0.0  ;;  %v3895_v55 = vadd.f32 %v6141_v32, %v7359_v15  ;;  %6120 = vmatprep.mubr.msk.bf16.mxu0 %vm827_vm2, %v7174_v6 }
 0x181   : > { %v5425_v47 = vpack.c.bf16 %v4024_v7, %v4024_v7  ;;  %v4025_v35 = vmax.f32 %v3897_v54, 0.0  ;;  %v6540_v7 = vld [vmem:[%s6632_s28 + $0x1e0] sm:$0xff]  }
 0x182   : > { %v5423_v29 = vpack.c.bf16 %v4022_v46, %v4022_v46  ;;  %v4023_v58 = vmax.f32 %v3895_v55, 0.0  ;;  %v6014_v44 = vpop.f32.mrb[12].mxu0 }
 0x183   : > { %4665 = vst.msk [vmem:[%s7379_s11 + $0x28] sm:$0xf] %vm4654_vm3, %v5425_v47  ;;  %v5426_v36 = vpack.c.bf16 %v4025_v35, %v4025_v35  ;;  %v6142_v4 = vadd.f32 %v6014_v44, %v7157_v62  ;;  %v3288_v50 = vpop.f32.mrb[13].mxu0  ;;  %v3001_v62 = vld [vmem:[#allocation2 + $0x210] sm:$0xff] }
 0x184   : > { %4663 = vst.msk [vmem:[%s7379_s11 + $0x20] sm:$0xf] %vm4654_vm3, %v5423_v29  ;;  %v5424_v19 = vpack.c.bf16 %v4023_v58, %v4023_v58  ;;  %v6143_v6 = vadd.f32 %v3288_v50, %v7162_v2  ;;  %v6015_v51 = vpop.f32.mrb[14].mxu0  ;;  %v3002_v29 = vld [vmem:[#allocation2 + $0x218] sm:$0xff] }
 0x185   : > { %4666 = vst.msk [vmem:[%s7379_s11 + $0x2c] sm:$0xf] %vm4654_vm3, %v5426_v36  ;;  %v3900_v56 = vadd.f32 %v6142_v4, %v7359_v15  ;;  %v6144_v30 = vadd.f32 %v6015_v51, %v7167_v3  ;;  %v3291_v13 = vpop.f32.mrb[15].mxu0  ;;  %5987 = vmatmul.mubr.msk.bf16.gmra.mrb[116].mxu1 %vm827_vm2, %v6539_v45 }
 0x186   : > { %4664 = vst.msk [vmem:[%s7379_s11 + $0x24] sm:$0xf] %vm4654_vm3, %v5424_v19  ;;  %v3898_v60 = vadd.f32 %v6143_v6, %v7359_v15  ;;  %v6145_v2 = vadd.f32 %v3291_v13, %v7172_v5  ;;  %5990 = vmatprep.mubr.msk.bf16.mxu1 %vm827_vm2, %v6540_v7 }
 0x187   : > { %v4028_v39 = vmax.f32 %v3900_v56, 0.0  ;;  %v3901_v41 = vadd.f32 %v6144_v30, %v7359_v15  ;;  %6121 = vmatmul.mubr.msk.bf16.gmra.mrb[120].mxu0 %vm827_vm2, %v7190_v12  ;;  %v6544_v30 = vld [vmem:[%s6632_s28 + $0x1f0] sm:$0xff]  }
 0x188   : > { %v4026_v3 = vmax.f32 %v3898_v60, 0.0  ;;  %v3899_v31 = vadd.f32 %v6145_v2, %v7359_v15  ;;  %6124 = vmatprep.mubr.msk.bf16.mxu0 %vm827_vm2, %v3001_v62 }
 0x189   : > { %v5429_v53 = vpack.c.bf16 %v4028_v39, %v4028_v39  ;;  %v4029_v32 = vmax.f32 %v3901_v41, 0.0 }
 0x18a   : > { %v5427_v54 = vpack.c.bf16 %v4026_v3, %v4026_v3  ;;  %v4027_v46 = vmax.f32 %v3899_v31, 0.0  ;;  %v6018_v5 = vpop.f32.mrb[16].mxu0 }
 0x18b   : > { %4669 = vst.msk [vmem:[%s7379_s11 + $0x38] sm:$0xf] %vm4654_vm3, %v5429_v53  ;;  %v5430_v55 = vpack.c.bf16 %v4029_v32, %v4029_v32  ;;  %v6146_v38 = vadd.f32 %v6018_v5, %v7180_v8  ;;  %v3304_v12 = vpop.f32.mrb[17].mxu0 }
 0x18c   : > { %4667 = vst.msk [vmem:[%s7379_s11 + $0x30] sm:$0xf] %vm4654_vm3, %v5427_v54  ;;  %v5428_v47 = vpack.c.bf16 %v4027_v46, %v4027_v46  ;;  %v6147_v35 = vadd.f32 %v3304_v12, %v7184_v10  ;;  %v6019_v33 = vpop.f32.mrb[18].mxu0 }
 0x18d   : > { %4670 = vst.msk [vmem:[%s7379_s11 + $0x3c] sm:$0xf] %vm4654_vm3, %v5430_v55  ;;  %v3904_v58 = vadd.f32 %v6146_v38, %v7359_v15  ;;  %v6148_v44 = vadd.f32 %v6019_v33, %v7188_v11  ;;  %v3307_v36 = vpop.f32.mrb[19].mxu0  ;;  %v6541_v11 = vld [vmem:[%s6632_s28 + $0x1e8] sm:$0xff]   ;;  %v6545_v55 = vld [vmem:[%s6632_s28 + $0x1f8] sm:$0xff]  }
 0x18e   : > { %4668 = vst.msk [vmem:[%s7379_s11 + $0x34] sm:$0xf] %vm4654_vm3, %v5428_v47  ;;  %v3902_v8 = vadd.f32 %v6147_v35, %v7359_v15  ;;  %v6149_v10 = vadd.f32 %v3307_v36, %v7193_v14  ;;  %5991 = vmatmul.mubr.msk.bf16.gmra.mrb[120].mxu1 %vm827_vm2, %v6541_v11 }
 0x18f   : > { %v4032_v4 = vmax.f32 %v3904_v58, 0.0  ;;  %v3905_v50 = vadd.f32 %v6148_v44, %v7359_v15  ;;  %6125 = vmatmul.mubr.msk.bf16.gmra.mrb[124].mxu0 %vm827_vm2, %v3002_v29  ;;  %5994 = vmatprep.mubr.msk.bf16.mxu1 %vm827_vm2, %v6544_v30 }
 0x190   : > { %v4030_v19 = vmax.f32 %v3902_v8, 0.0  ;;  %v3903_v6 = vadd.f32 %v6149_v10, %v7359_v15 }
 0x191   : > { %v5433_v51 = vpack.c.bf16 %v4032_v4, %v4032_v4  ;;  %v4033_v56 = vmax.f32 %v3905_v50, 0.0 }
 0x192   : > { %v5431_v13 = vpack.c.bf16 %v4030_v19, %v4030_v19  ;;  %v4031_v62 = vmax.f32 %v3903_v6, 0.0  ;;  %v6022_v60 = vpop.f32.mrb[20].mxu0 }
 0x193   : > { %4673 = vst.msk [vmem:[%s7379_s11 + $0x48] sm:$0xf] %vm4654_vm3, %v5433_v51  ;;  %v5434_v14 = vpack.c.bf16 %v4033_v56, %v4033_v56  ;;  %v6150_v2 = vadd.f32 %v6022_v60, %v7198_v16  ;;  %v3320_v39 = vpop.f32.mrb[21].mxu0 }
 0x194   : > { %4671 = vst.msk [vmem:[%s7379_s11 + $0x40] sm:$0xf] %vm4654_vm3, %v5431_v13  ;;  %v5432_v41 = vpack.c.bf16 %v4031_v62, %v4031_v62  ;;  %v6151_v3 = vadd.f32 %v3320_v39, %v7202_v17  ;;  %v6023_v31 = vpop.f32.mrb[22].mxu0 }
 0x195   : > { %4674 = vst.msk [vmem:[%s7379_s11 + $0x4c] sm:$0xf] %vm4654_vm3, %v5434_v14  ;;  %v3908_v45 = vadd.f32 %v6150_v2, %v7359_v15  ;;  %v6152_v53 = vadd.f32 %v6023_v31, %v7207_v20  ;;  %v3323_v32 = vpop.f32.mrb[23].mxu0 }
 0x196   : > { %4672 = vst.msk [vmem:[%s7379_s11 + $0x44] sm:$0xf] %vm4654_vm3, %v5432_v41  ;;  %v3906_v16 = vadd.f32 %v6151_v3, %v7359_v15  ;;  %v6153_v7 = vadd.f32 %v3323_v32, %v7210_v22  ;;  %5995 = vmatmul.mubr.msk.bf16.gmra.mrb[124].mxu1 %vm827_vm2, %v6545_v55 }
 0x197   : > { %v4036_v54 = vmax.f32 %v3908_v45, 0.0  ;;  %v3909_v17 = vadd.f32 %v6152_v53, %v7359_v15 }
 0x198   : > { %v4034_v46 = vmax.f32 %v3906_v16, 0.0  ;;  %v3907_v5 = vadd.f32 %v6153_v7, %v7359_v15 }
 0x199   : > { %v5437_v20 = vpack.c.bf16 %v4036_v54, %v4036_v54  ;;  %v4037_v38 = vmax.f32 %v3909_v17, 0.0 }
 0x19a   : > { %v5435_v12 = vpack.c.bf16 %v4034_v46, %v4034_v46  ;;  %v4035_v47 = vmax.f32 %v3907_v5, 0.0  ;;  %v6026_v35 = vpop.f32.mrb[24].mxu0 }
 0x19b   : > { %4677 = vst.msk [vmem:[%s7379_s11 + $0x58] sm:$0xf] %vm4654_vm3, %v5437_v20  ;;  %v5438_v33 = vpack.c.bf16 %v4037_v38, %v4037_v38  ;;  %v6154_v29 = vadd.f32 %v6026_v35, %v7214_v23  ;;  %v3336_v22 = vpop.f32.mrb[25].mxu0 }
 0x19c   : > { %4675 = vst.msk [vmem:[%s7379_s11 + $0x50] sm:$0xf] %vm4654_vm3, %v5435_v12  ;;  %v5436_v58 = vpack.c.bf16 %v4035_v47, %v4035_v47  ;;  %v6155_v44 = vadd.f32 %v3336_v22, %v7218_v25  ;;  %v6027_v36 = vpop.f32.mrb[26].mxu0 }
 0x19d   : > { %4678 = vst.msk [vmem:[%s7379_s11 + $0x5c] sm:$0xf] %vm4654_vm3, %v5438_v33  ;;  %v3912_v8 = vadd.f32 %v6154_v29, %v7359_v15  ;;  %v6156_v10 = vadd.f32 %v6027_v36, %v7223_v26  ;;  %v3339_v4 = vpop.f32.mrb[27].mxu0 }
 0x19e   : > { %4676 = vst.msk [vmem:[%s7379_s11 + $0x54] sm:$0xf] %vm4654_vm3, %v5436_v58  ;;  %v3910_v23 = vadd.f32 %v6155_v44, %v7359_v15  ;;  %v6157_v50 = vadd.f32 %v3339_v4, %v7226_v27 }
 0x19f   : > { %v4040_v19 = vmax.f32 %v3912_v8, 0.0  ;;  %v3913_v6 = vadd.f32 %v6156_v10, %v7359_v15 }
 0x1a0   : > { %v4038_v25 = vmax.f32 %v3910_v23, 0.0  ;;  %v3911_v11 = vadd.f32 %v6157_v50, %v7359_v15 }
 0x1a1   : > { %v5441_v51 = vpack.c.bf16 %v4040_v19, %v4040_v19  ;;  %v4041_v56 = vmax.f32 %v3913_v6, 0.0 }
 0x1a2   : > { %v5439_v30 = vpack.c.bf16 %v4038_v25, %v4038_v25  ;;  %v4039_v26 = vmax.f32 %v3911_v11, 0.0  ;;  %v6030_v13 = vpop.f32.mrb[28].mxu0 }
 0x1a3   : > { %4681 = vst.msk [vmem:[%s7379_s11 + $0x68] sm:$0xf] %vm4654_vm3, %v5441_v51  ;;  %v5442_v62 = vpack.c.bf16 %v4041_v56, %v4041_v56  ;;  %v6158_v60 = vadd.f32 %v6030_v13, %v7230_v28  ;;  %v3352_v14 = vpop.f32.mrb[29].mxu0 }
 0x1a4   : > { %4679 = vst.msk [vmem:[%s7379_s11 + $0x60] sm:$0xf] %vm4654_vm3, %v5439_v30  ;;  %v5440_v27 = vpack.c.bf16 %v4039_v26, %v4039_v26  ;;  %v6159_v2 = vadd.f32 %v3352_v14, %v7234_v34  ;;  %v6031_v39 = vpop.f32.mrb[30].mxu0  ;;  %v7900_v30 = vld [vmem:[#allocation3_spill] sm:$0xff] }
 0x1a5   : > { %4682 = vst.msk [vmem:[%s7379_s11 + $0x6c] sm:$0xf] %vm4654_vm3, %v5442_v62  ;;  %v3916_v41 = vadd.f32 %v6158_v60, %v7359_v15  ;;  %v6160_v3 = vadd.f32 %v6031_v39, %v7239_v42  ;;  %v3355_v31 = vpop.f32.mrb[31].mxu0 }
 0x1a6   : > { %4680 = vst.msk [vmem:[%s7379_s11 + $0x64] sm:$0xf] %vm4654_vm3, %v5440_v27  ;;  %v3914_v28 = vadd.f32 %v6159_v2, %v7359_v15  ;;  %v6161_v45 = vadd.f32 %v3355_v31, %v7242_v49 }
 0x1a7   : > { %v4044_v53 = vmax.f32 %v3916_v41, 0.0  ;;  %v3917_v32 = vadd.f32 %v6160_v3, %v7359_v15 }
 0x1a8   : > { %v4042_v34 = vmax.f32 %v3914_v28, 0.0  ;;  %v3915_v16 = vadd.f32 %v6161_v45, %v7359_v15 }
 0x1a9   : > { %v5445_v7 = vpack.c.bf16 %v4044_v53, %v4044_v53  ;;  %v4045_v54 = vmax.f32 %v3917_v32, 0.0 }
 0x1aa   : > { %v5443_v17 = vpack.c.bf16 %v4042_v34, %v4042_v34  ;;  %v4043_v42 = vmax.f32 %v3915_v16, 0.0  ;;  %v6034_v46 = vpop.f32.mrb[32].mxu0  ;;  %v7901_v34 = vld [vmem:[#allocation4_spill] sm:$0xff] }
 0x1ab   : > { %4685 = vst.msk [vmem:[%s7379_s11 + $0x78] sm:$0xf] %vm4654_vm3, %v5445_v7  ;;  %v5446_v5 = vpack.c.bf16 %v4045_v54, %v4045_v54  ;;  %v6162_v55 = vadd.f32 %v6034_v46, %v7246_v61  ;;  %v3368_v20 = vpop.f32.mrb[33].mxu0  ;;  %v7902_v54 = vld [vmem:[#allocation5_spill] sm:$0xff] }
 0x1ac   : > { %4683 = vst.msk [vmem:[%s7379_s11 + $0x70] sm:$0xf] %vm4654_vm3, %v5443_v17  ;;  %v5444_v49 = vpack.c.bf16 %v4043_v42, %v4043_v42  ;;  %v6163_v38 = vadd.f32 %v3368_v20, %v7250_v52  ;;  %v6035_v12 = vpop.f32.mrb[34].mxu0 }
 0x1ad   : > { %4686 = vst.msk [vmem:[%s7379_s11 + $0x7c] sm:$0xf] %vm4654_vm3, %v5446_v5  ;;  %v3920_v47 = vadd.f32 %v6162_v55, %v7359_v15  ;;  %v6164_v35 = vadd.f32 %v6035_v12, %v7255_v57  ;;  %v3371_v33 = vpop.f32.mrb[35].mxu0 }
 0x1ae   : > { %4684 = vst.msk [vmem:[%s7379_s11 + $0x74] sm:$0xf] %vm4654_vm3, %v5444_v49  ;;  %v3918_v61 = vadd.f32 %v6163_v38, %v7359_v15  ;;  %v6165_v29 = vadd.f32 %v3371_v33, %v7258_v18 }
 0x1af   : > { %v4048_v22 = vmax.f32 %v3920_v47, 0.0  ;;  %v3921_v58 = vadd.f32 %v6164_v35, %v7359_v15 }
 0x1b0   : > { %v4046_v52 = vmax.f32 %v3918_v61, 0.0  ;;  %v3919_v44 = vadd.f32 %v6165_v29, %v7359_v15 }
 0x1b1   : > { %v5449_v36 = vpack.c.bf16 %v4048_v22, %v4048_v22  ;;  %v4049_v8 = vmax.f32 %v3921_v58, 0.0 }
 0x1b2   : > { %v5447_v10 = vpack.c.bf16 %v4046_v52, %v4046_v52  ;;  %v4047_v57 = vmax.f32 %v3919_v44, 0.0  ;;  %v6038_v4 = vpop.f32.mrb[36].mxu0  ;;  %v7903_v52 = vld [vmem:[#allocation6_spill] sm:$0xff] }
 0x1b3   : > { %4689 = vst.msk [vmem:[%s7379_s11 + $0x88] sm:$0xf] %vm4654_vm3, %v5449_v36  ;;  %v5450_v23 = vpack.c.bf16 %v4049_v8, %v4049_v8  ;;  %v6166_v50 = vadd.f32 %v6038_v4, %v7262_v21  ;;  %v3384_v19 = vpop.f32.mrb[37].mxu0  ;;  %v7904_v8 = vld [vmem:[#allocation7_spill] sm:$0xff] }
 0x1b4   : > { %4687 = vst.msk [vmem:[%s7379_s11 + $0x80] sm:$0xf] %vm4654_vm3, %v5447_v10  ;;  %v5448_v18 = vpack.c.bf16 %v4047_v57, %v4047_v57  ;;  %v6167_v6 = vadd.f32 %v3384_v19, %v7266_v59  ;;  %v6039_v25 = vpop.f32.mrb[38].mxu0 }
 0x1b5   : > { %4690 = vst.msk [vmem:[%s7379_s11 + $0x8c] sm:$0xf] %vm4654_vm3, %v5450_v23  ;;  %v3924_v11 = vadd.f32 %v6166_v50, %v7359_v15  ;;  %v6168_v51 = vadd.f32 %v6039_v25, %v7271_v0  ;;  %v3387_v56 = vpop.f32.mrb[39].mxu0 }
 0x1b6   : > { %4688 = vst.msk [vmem:[%s7379_s11 + $0x84] sm:$0xf] %vm4654_vm3, %v5448_v18  ;;  %v3922_v21 = vadd.f32 %v6167_v6, %v7359_v15  ;;  %v6169_v26 = vadd.f32 %v3387_v56, %v7900_v30  ;;  %v7905_v30 = vld [vmem:[#allocation8_spill] sm:$0xff] }
 0x1b7   : > { %v4052_v13 = vmax.f32 %v3924_v11, 0.0  ;;  %v3925_v62 = vadd.f32 %v6168_v51, %v7359_v15 }
 0x1b8   : > { %v4050_v59 = vmax.f32 %v3922_v21, 0.0  ;;  %v3923_v60 = vadd.f32 %v6169_v26, %v7359_v15 }
 0x1b9   : > { %v5453_v14 = vpack.c.bf16 %v4052_v13, %v4052_v13  ;;  %v4053_v27 = vmax.f32 %v3925_v62, 0.0 }
 0x1ba   : > { %v5451_v2 = vpack.c.bf16 %v4050_v59, %v4050_v59  ;;  %v4051_v0 = vmax.f32 %v3923_v60, 0.0  ;;  %v6042_v39 = vpop.f32.mrb[40].mxu0  ;;  %v7906_v59 = vld [vmem:[#allocation9_spill] sm:$0xff] }
 0x1bb   : > { %4693 = vst.msk [vmem:[%s7379_s11 + $0x98] sm:$0xf] %vm4654_vm3, %v5453_v14  ;;  %v5454_v41 = vpack.c.bf16 %v4053_v27, %v4053_v27  ;;  %v6170_v3 = vadd.f32 %v6042_v39, %v7278_v43  ;;  %v3400_v31 = vpop.f32.mrb[41].mxu0  ;;  %v7907_v27 = vld [vmem:[#allocation10_spill] sm:$0xff] }
 0x1bc   : > { %4691 = vst.msk [vmem:[%s7379_s11 + $0x90] sm:$0xf] %vm4654_vm3, %v5451_v2  ;;  %v5452_v28 = vpack.c.bf16 %v4051_v0, %v4051_v0  ;;  %v6171_v45 = vadd.f32 %v3400_v31, %v7282_v1  ;;  %v6043_v53 = vpop.f32.mrb[42].mxu0 }
 0x1bd   : > { %4694 = vst.msk [vmem:[%s7379_s11 + $0x9c] sm:$0xf] %vm4654_vm3, %v5454_v41  ;;  %v3928_v32 = vadd.f32 %v6170_v3, %v7359_v15  ;;  %v6172_v16 = vadd.f32 %v6043_v53, %v7901_v34  ;;  %v3403_v7 = vpop.f32.mrb[43].mxu0 }
 0x1be   : > { %4692 = vst.msk [vmem:[%s7379_s11 + $0x94] sm:$0xf] %vm4654_vm3, %v5452_v28  ;;  %v3926_v43 = vadd.f32 %v6171_v45, %v7359_v15  ;;  %v6173_v17 = vadd.f32 %v3403_v7, %v7902_v54 }
 0x1bf   : > { %v4056_v42 = vmax.f32 %v3928_v32, 0.0  ;;  %v3929_v46 = vadd.f32 %v6172_v16, %v7359_v15  ;;  %v7908_v16 = vld [vmem:[#allocation11_spill] sm:$0xff] }
 0x1c0   : > { %v4054_v1 = vmax.f32 %v3926_v43, 0.0  ;;  %v3927_v5 = vadd.f32 %v6173_v17, %v7359_v15  ;;  %v7909_v17 = vld [vmem:[#allocation12_spill] sm:$0xff] }
 0x1c1   : > { %v5457_v55 = vpack.c.bf16 %v4056_v42, %v4056_v42  ;;  %v4057_v20 = vmax.f32 %v3929_v46, 0.0 }
 0x1c2   : > { %v5455_v49 = vpack.c.bf16 %v4054_v1, %v4054_v1  ;;  %v4055_v38 = vmax.f32 %v3927_v5, 0.0  ;;  %v6046_v12 = vpop.f32.mrb[44].mxu0  ;;  %v7910_v5 = vld [vmem:[#allocation13_spill] sm:$0xff] }
 0x1c3   : > { %4697 = vst.msk [vmem:[%s7379_s11 + $0xa8] sm:$0xf] %vm4654_vm3, %v5457_v55  ;;  %v5458_v47 = vpack.c.bf16 %v4057_v20, %v4057_v20  ;;  %v6174_v35 = vadd.f32 %v6046_v12, %v7294_v24  ;;  %v3416_v33 = vpop.f32.mrb[45].mxu0 }
 0x1c4   : > { %4695 = vst.msk [vmem:[%s7379_s11 + $0xa0] sm:$0xf] %vm4654_vm3, %v5455_v49  ;;  %v5456_v61 = vpack.c.bf16 %v4055_v38, %v4055_v38  ;;  %v6175_v29 = vadd.f32 %v3416_v33, %v7298_v9  ;;  %v6047_v22 = vpop.f32.mrb[46].mxu0  ;;  %v7911_v38 = vld [vmem:[#allocation14_spill] sm:$0xff] }
 0x1c5   : > { %4698 = vst.msk [vmem:[%s7379_s11 + $0xac] sm:$0xf] %vm4654_vm3, %v5458_v47  ;;  %v3932_v58 = vadd.f32 %v6174_v35, %v7359_v15  ;;  %v6176_v44 = vadd.f32 %v6047_v22, %v7903_v52  ;;  %v3419_v36 = vpop.f32.mrb[47].mxu0 }
 0x1c6   : > { %4696 = vst.msk [vmem:[%s7379_s11 + $0xa4] sm:$0xf] %vm4654_vm3, %v5456_v61  ;;  %v3930_v24 = vadd.f32 %v6175_v29, %v7359_v15  ;;  %v6177_v10 = vadd.f32 %v3419_v36, %v7904_v8 }
 0x1c7   : > { %v4060_v57 = vmax.f32 %v3932_v58, 0.0  ;;  %v3933_v4 = vadd.f32 %v6176_v44, %v7359_v15 }
 0x1c8   : > { %v4058_v9 = vmax.f32 %v3930_v24, 0.0  ;;  %v3931_v23 = vadd.f32 %v6177_v10, %v7359_v15  ;;  %v7912_v24 = vld [vmem:[#allocation15_spill] sm:$0xff] }
 0x1c9   : > { %v5461_v50 = vpack.c.bf16 %v4060_v57, %v4060_v57  ;;  %v4061_v19 = vmax.f32 %v3933_v4, 0.0  ;;  %v7913_v4 = vld [vmem:[#allocation16_spill] sm:$0xff] }
 0x1ca   : > { %v5459_v18 = vpack.c.bf16 %v4058_v9, %v4058_v9  ;;  %v4059_v6 = vmax.f32 %v3931_v23, 0.0  ;;  %v6050_v25 = vpop.f32.mrb[48].mxu0 }
 0x1cb   : > { %4701 = vst.msk [vmem:[%s7379_s11 + $0xb8] sm:$0xf] %vm4654_vm3, %v5461_v50  ;;  %v5462_v11 = vpack.c.bf16 %v4061_v19, %v4061_v19  ;;  %v6178_v51 = vadd.f32 %v6050_v25, %v7310_v63  ;;  %v3432_v56 = vpop.f32.mrb[49].mxu0  ;;  %v7914_v19 = vld [vmem:[#allocation17_spill] sm:$0xff] }
 0x1cc   : > { %4699 = vst.msk [vmem:[%s7379_s11 + $0xb0] sm:$0xf] %vm4654_vm3, %v5459_v18  ;;  %v5460_v21 = vpack.c.bf16 %v4059_v6, %v4059_v6  ;;  %v6179_v26 = vadd.f32 %v3432_v56, %v7905_v30  ;;  %v6051_v13 = vpop.f32.mrb[50].mxu0 }
 0x1cd   : > { %4702 = vst.msk [vmem:[%s7379_s11 + $0xbc] sm:$0xf] %vm4654_vm3, %v5462_v11  ;;  %v3936_v62 = vadd.f32 %v6178_v51, %v7359_v15  ;;  %v6180_v60 = vadd.f32 %v6051_v13, %v7906_v59  ;;  %v3435_v14 = vpop.f32.mrb[51].mxu0  ;;  %v7915_v11 = vld [vmem:[#allocation18_spill] sm:$0xff] }
 0x1ce   : > { %4700 = vst.msk [vmem:[%s7379_s11 + $0xb4] sm:$0xf] %vm4654_vm3, %v5460_v21  ;;  %v3934_v63 = vadd.f32 %v6179_v26, %v7359_v15  ;;  %v6181_v2 = vadd.f32 %v3435_v14, %v7907_v27 }
 0x1cf   : > { %v4064_v0 = vmax.f32 %v3936_v62, 0.0  ;;  %v3937_v39 = vadd.f32 %v6180_v60, %v7359_v15 }
 0x1d0   : > { %v4062_v41 = vmax.f32 %v3934_v63, 0.0  ;;  %v3935_v3 = vadd.f32 %v6181_v2, %v7359_v15 }
 0x1d1   : > { %v5465_v31 = vpack.c.bf16 %v4064_v0, %v4064_v0  ;;  %v4065_v28 = vmax.f32 %v3937_v39, 0.0  ;;  %v7916_v39 = vld [vmem:[#allocation19_spill] sm:$0xff] }
 0x1d2   : > { %v5463_v45 = vpack.c.bf16 %v4062_v41, %v4062_v41  ;;  %v4063_v53 = vmax.f32 %v3935_v3, 0.0  ;;  %v6054_v32 = vpop.f32.mrb[52].mxu0 }
 0x1d3   : > { %4705 = vst.msk [vmem:[%s7379_s11 + $0xc8] sm:$0xf] %vm4654_vm3, %v5465_v31  ;;  %v5466_v34 = vpack.c.bf16 %v4065_v28, %v4065_v28  ;;  %v6182_v7 = vadd.f32 %v6054_v32, %v7908_v16  ;;  %v3448_v43 = vpop.f32.mrb[53].mxu0 }
 0x1d4   : > { %4703 = vst.msk [vmem:[%s7379_s11 + $0xc0] sm:$0xf] %vm4654_vm3, %v5463_v45  ;;  %v5464_v54 = vpack.c.bf16 %v4063_v53, %v4063_v53  ;;  %v6183_v42 = vadd.f32 %v3448_v43, %v7909_v17  ;;  %v6055_v46 = vpop.f32.mrb[54].mxu0 }
 0x1d5   : > { %4706 = vst.msk [vmem:[%s7379_s11 + $0xcc] sm:$0xf] %vm4654_vm3, %v5466_v34  ;;  %v3940_v1 = vadd.f32 %v6182_v7, %v7359_v15  ;;  %v6184_v55 = vadd.f32 %v6055_v46, %v7910_v5  ;;  %v3451_v20 = vpop.f32.mrb[55].mxu0 }
 0x1d6   : > { %4704 = vst.msk [vmem:[%s7379_s11 + $0xc4] sm:$0xf] %vm4654_vm3, %v5464_v54  ;;  %v3938_v49 = vadd.f32 %v6183_v42, %v7359_v15  ;;  %v6185_v12 = vadd.f32 %v3451_v20, %v7911_v38 }
 0x1d7   : > { %v4068_v47 = vmax.f32 %v3940_v1, 0.0  ;;  %v3941_v35 = vadd.f32 %v6184_v55, %v7359_v15 }
 0x1d8   : > { %v4066_v33 = vmax.f32 %v3938_v49, 0.0  ;;  %v3939_v61 = vadd.f32 %v6185_v12, %v7359_v15 }
 0x1d9   : > { %v5469_v29 = vpack.c.bf16 %v4068_v47, %v4068_v47  ;;  %v4069_v22 = vmax.f32 %v3941_v35, 0.0 }
 0x1da   : > { %v5467_v58 = vpack.c.bf16 %v4066_v33, %v4066_v33  ;;  %v4067_v52 = vmax.f32 %v3939_v61, 0.0  ;;  %v6058_v44 = vpop.f32.mrb[56].mxu0 }
 0x1db   : > { %4709 = vst.msk [vmem:[%s7379_s11 + $0xd8] sm:$0xf] %vm4654_vm3, %v5469_v29  ;;  %v5470_v36 = vpack.c.bf16 %v4069_v22, %v4069_v22  ;;  %v6186_v8 = vadd.f32 %v6058_v44, %v7912_v24  ;;  %v3464_v10 = vpop.f32.mrb[57].mxu0 }
 0x1dc   : > { %4707 = vst.msk [vmem:[%s7379_s11 + $0xd0] sm:$0xf] %vm4654_vm3, %v5467_v58  ;;  %v5468_v57 = vpack.c.bf16 %v4067_v52, %v4067_v52  ;;  %v6187_v9 = vadd.f32 %v3464_v10, %v7913_v4  ;;  %v6059_v23 = vpop.f32.mrb[58].mxu0 }
 0x1dd   : > { %4710 = vst.msk [vmem:[%s7379_s11 + $0xdc] sm:$0xf] %vm4654_vm3, %v5470_v36  ;;  %v3944_v50 = vadd.f32 %v6186_v8, %v7359_v15  ;;  %v6188_v18 = vadd.f32 %v6059_v23, %v7914_v19  ;;  %v3467_v6 = vpop.f32.mrb[59].mxu0 }
 0x1de   : > { %4708 = vst.msk [vmem:[%s7379_s11 + $0xd4] sm:$0xf] %vm4654_vm3, %v5468_v57  ;;  %v3942_v25 = vadd.f32 %v6187_v9, %v7359_v15  ;;  %v6189_v51 = vadd.f32 %v3467_v6, %v7915_v11 }
 0x1df   : > { %v4072_v56 = vmax.f32 %v3944_v50, 0.0  ;;  %v3945_v21 = vadd.f32 %v6188_v18, %v7359_v15 }
 0x1e0   : > { %v4070_v30 = vmax.f32 %v3942_v25, 0.0  ;;  %v3943_v26 = vadd.f32 %v6189_v51, %v7359_v15 }
 0x1e1   : > { %v5473_v13 = vpack.c.bf16 %v4072_v56, %v4072_v56  ;;  %v4073_v62 = vmax.f32 %v3945_v21, 0.0 }
 0x1e2   : > { %v5471_v59 = vpack.c.bf16 %v4070_v30, %v4070_v30  ;;  %v4071_v60 = vmax.f32 %v3943_v26, 0.0  ;;  %v6062_v14 = vpop.f32.mrb[60].mxu0 }
 0x1e3   : > { %4713 = vst.msk [vmem:[%s7379_s11 + $0xe8] sm:$0xf] %vm4654_vm3, %v5473_v13  ;;  %v5474_v63 = vpack.c.bf16 %v4073_v62, %v4073_v62  ;;  %v6190_v27 = vadd.f32 %v6062_v14, %v7369_v37  ;;  %v3480_v2 = vpop.f32.mrb[61].mxu0 }
 0x1e4   : > { %4711 = vst.msk [vmem:[%s7379_s11 + $0xe0] sm:$0xf] %vm4654_vm3, %v5471_v59  ;;  %v5472_v0 = vpack.c.bf16 %v4071_v60, %v4071_v60  ;;  %v6191_v41 = vadd.f32 %v3480_v2, %v7916_v39  ;;  %v6063_v3 = vpop.f32.mrb[62].mxu0 }
 0x1e5   : > { %4714 = vst.msk [vmem:[%s7379_s11 + $0xec] sm:$0xf] %vm4654_vm3, %v5474_v63  ;;  %v3948_v31 = vadd.f32 %v6190_v27, %v7359_v15  ;;  %v6192_v28 = vadd.f32 %v6063_v3, %v7387_v48  ;;  %v3483_v45 = vpop.f32.mrb[63].mxu0 }
 0x1e6   : > { %4712 = vst.msk [vmem:[%s7379_s11 + $0xe4] sm:$0xf] %vm4654_vm3, %v5472_v0  ;;  %v3946_v37 = vadd.f32 %v6191_v41, %v7359_v15  ;;  %v6193_v53 = vadd.f32 %v3483_v45, %v7390_v40 }
 0x1e7   : > { %v4076_v32 = vmax.f32 %v3948_v31, 0.0  ;;  %v3949_v34 = vadd.f32 %v6192_v28, %v7359_v15 }
 0x1e8   : > { %v4074_v16 = vmax.f32 %v3946_v37, 0.0  ;;  %v3947_v7 = vadd.f32 %v6193_v53, %v7359_v15 }
 0x1e9   : > { %v5477_v43 = vpack.c.bf16 %v4076_v32, %v4076_v32  ;;  %v4077_v54 = vmax.f32 %v3949_v34, 0.0 }
 0x1ea   : > { %v5475_v17 = vpack.c.bf16 %v4074_v16, %v4074_v16  ;;  %v4075_v48 = vmax.f32 %v3947_v7, 0.0  ;;  %v6066_v42 = vpop.f32.mrb[64].mxu0 }
 0x1eb   : > { %4717 = vst.msk [vmem:[%s7379_s11 + $0xf8] sm:$0xf] %vm4654_vm3, %v5477_v43  ;;  %v5478_v46 = vpack.c.bf16 %v4077_v54, %v4077_v54  ;;  %v3496_v1 = vpop.f32.mrb[65].mxu0 }
 0x1ec   : > { %4715 = vst.msk [vmem:[%s7379_s11 + $0xf0] sm:$0xf] %vm4654_vm3, %v5475_v17  ;;  %v5476_v40 = vpack.c.bf16 %v4075_v48, %v4075_v48  ;;  %v6067_v5 = vpop.f32.mrb[66].mxu0 }
 0x1ed   : > { %4718 = vst.msk [vmem:[%s7379_s11 + $0xfc] sm:$0xf] %vm4654_vm3, %v5478_v46  ;;  %v3499_v55 = vpop.f32.mrb[67].mxu0 }
 0x1ee   : > { %4716 = vst.msk [vmem:[%s7379_s11 + $0xf4] sm:$0xf] %vm4654_vm3, %v5476_v40 }
 0x1f0   : > { %v5936_v47 = vpop.f32.mrb[64].mxu1 }
 0x1f1   : > { %v6194_v35 = vadd.f32 %v6066_v42, %v5936_v47  ;;  %v2684_v33 = vpop.f32.mrb[65].mxu1 }
 0x1f2   : > { %v6070_v20 = vpop.f32.mrb[68].mxu0  ;;  %v6195_v61 = vadd.f32 %v3496_v1, %v2684_v33  ;;  %v5937_v29 = vpop.f32.mrb[66].mxu1 }
 0x1f3   : > { %v3512_v49 = vpop.f32.mrb[69].mxu0  ;;  %v3952_v22 = vadd.f32 %v6194_v35, %v7359_v15  ;;  %v6196_v58 = vadd.f32 %v6067_v5, %v5937_v29  ;;  %v2687_v52 = vpop.f32.mrb[67].mxu1 }
 0x1f4   : > { %v6071_v38 = vpop.f32.mrb[70].mxu0  ;;  %v3950_v36 = vadd.f32 %v6195_v61, %v7359_v15  ;;  %v6197_v24 = vadd.f32 %v3499_v55, %v2687_v52 }
 0x1f5   : > { %v3515_v12 = vpop.f32.mrb[71].mxu0  ;;  %v4080_v10 = vmax.f32 %v3952_v22, 0.0  ;;  %v3953_v57 = vadd.f32 %v6196_v58, %v7359_v15 }
 0x1f6   : > { %v4078_v9 = vmax.f32 %v3950_v36, 0.0  ;;  %v3951_v23 = vadd.f32 %v6197_v24, %v7359_v15 }
 0x1f7   : > { %v5481_v19 = vpack.c.bf16 %v4080_v10, %v4080_v10  ;;  %v4081_v18 = vmax.f32 %v3953_v57, 0.0 }
 0x1f8   : > { %v5479_v6 = vpack.c.bf16 %v4078_v9, %v4078_v9  ;;  %v4079_v25 = vmax.f32 %v3951_v23, 0.0  ;;  %v5940_v11 = vpop.f32.mrb[68].mxu1 }
 0x1f9   : > { %4721 = vst.msk [vmem:[%s7379_s11 + $0x108] sm:$0xf] %vm4654_vm3, %v5481_v19  ;;  %v5482_v51 = vpack.c.bf16 %v4081_v18, %v4081_v18  ;;  %v6198_v56 = vadd.f32 %v6070_v20, %v5940_v11  ;;  %v2700_v21 = vpop.f32.mrb[69].mxu1 }
 0x1fa   : > { %v6074_v44 = vpop.f32.mrb[72].mxu0  ;;  %4719 = vst.msk [vmem:[%s7379_s11 + $0x100] sm:$0xf] %vm4654_vm3, %v5479_v6  ;;  %v5480_v30 = vpack.c.bf16 %v4079_v25, %v4079_v25  ;;  %v6199_v26 = vadd.f32 %v3512_v49, %v2700_v21  ;;  %v5941_v13 = vpop.f32.mrb[70].mxu1 }
 0x1fb   : > { %v3528_v8 = vpop.f32.mrb[73].mxu0  ;;  %4722 = vst.msk [vmem:[%s7379_s11 + $0x10c] sm:$0xf] %vm4654_vm3, %v5482_v51  ;;  %v3956_v62 = vadd.f32 %v6198_v56, %v7359_v15  ;;  %v6200_v59 = vadd.f32 %v6071_v38, %v5941_v13  ;;  %v2703_v60 = vpop.f32.mrb[71].mxu1 }
 0x1fc   : > { %v6075_v4 = vpop.f32.mrb[74].mxu0  ;;  %4720 = vst.msk [vmem:[%s7379_s11 + $0x104] sm:$0xf] %vm4654_vm3, %v5480_v30  ;;  %v3954_v63 = vadd.f32 %v6199_v26, %v7359_v15  ;;  %v6201_v27 = vadd.f32 %v3515_v12, %v2703_v60 }
 0x1fd   : > { %v3531_v50 = vpop.f32.mrb[75].mxu0  ;;  %v4084_v0 = vmax.f32 %v3956_v62, 0.0  ;;  %v3957_v39 = vadd.f32 %v6200_v59, %v7359_v15 }
 0x1fe   : > { %v4082_v3 = vmax.f32 %v3954_v63, 0.0  ;;  %v3955_v31 = vadd.f32 %v6201_v27, %v7359_v15 }
 0x1ff   : > { %v5485_v45 = vpack.c.bf16 %v4084_v0, %v4084_v0  ;;  %v4085_v37 = vmax.f32 %v3957_v39, 0.0 }
 0x200   : > { %v5483_v53 = vpack.c.bf16 %v4082_v3, %v4082_v3  ;;  %v4083_v32 = vmax.f32 %v3955_v31, 0.0  ;;  %v5944_v34 = vpop.f32.mrb[72].mxu1 }
 0x201   : > { %4725 = vst.msk [vmem:[%s7379_s11 + $0x118] sm:$0xf] %vm4654_vm3, %v5485_v45  ;;  %v5486_v16 = vpack.c.bf16 %v4085_v37, %v4085_v37  ;;  %v6202_v7 = vadd.f32 %v6074_v44, %v5944_v34  ;;  %v2716_v43 = vpop.f32.mrb[73].mxu1 }
 0x202   : > { %v6078_v14 = vpop.f32.mrb[76].mxu0  ;;  %4723 = vst.msk [vmem:[%s7379_s11 + $0x110] sm:$0xf] %vm4654_vm3, %v5483_v53  ;;  %v5484_v54 = vpack.c.bf16 %v4083_v32, %v4083_v32  ;;  %v6203_v17 = vadd.f32 %v3528_v8, %v2716_v43  ;;  %v5945_v48 = vpop.f32.mrb[74].mxu1 }
 0x203   : > { %v3544_v2 = vpop.f32.mrb[77].mxu0  ;;  %4726 = vst.msk [vmem:[%s7379_s11 + $0x11c] sm:$0xf] %vm4654_vm3, %v5486_v16  ;;  %v3960_v42 = vadd.f32 %v6202_v7, %v7359_v15  ;;  %v6204_v46 = vadd.f32 %v6075_v4, %v5945_v48  ;;  %v2719_v1 = vpop.f32.mrb[75].mxu1 }
 0x204   : > { %v6079_v41 = vpop.f32.mrb[78].mxu0  ;;  %4724 = vst.msk [vmem:[%s7379_s11 + $0x114] sm:$0xf] %vm4654_vm3, %v5484_v54  ;;  %v3958_v5 = vadd.f32 %v6203_v17, %v7359_v15  ;;  %v6205_v55 = vadd.f32 %v3531_v50, %v2719_v1 }
 0x205   : > { %v3547_v28 = vpop.f32.mrb[79].mxu0  ;;  %v4088_v49 = vmax.f32 %v3960_v42, 0.0  ;;  %v3961_v38 = vadd.f32 %v6204_v46, %v7359_v15 }
 0x206   : > { %v4086_v47 = vmax.f32 %v3958_v5, 0.0  ;;  %v3959_v35 = vadd.f32 %v6205_v55, %v7359_v15  ;;  %v7709_v15 = vld [vmem:[%s7881_s3] ss:$0 sm:$0xff] }
 0x207   : > { %v5489_v61 = vpack.c.bf16 %v4088_v49, %v4088_v49  ;;  %v4089_v29 = vmax.f32 %v3961_v38, 0.0 }
 0x208   : > { %v5487_v22 = vpack.c.bf16 %v4086_v47, %v4086_v47  ;;  %v4087_v58 = vmax.f32 %v3959_v35, 0.0  ;;  %v5948_v52 = vpop.f32.mrb[76].mxu1 }
 0x209   : > { %4729 = vst.msk [vmem:[%s7379_s11 + $0x128] sm:$0xf] %vm4654_vm3, %v5489_v61  ;;  %v5490_v44 = vpack.c.bf16 %v4089_v29, %v4089_v29  ;;  %v6206_v36 = vadd.f32 %v6078_v14, %v5948_v52  ;;  %v2732_v24 = vpop.f32.mrb[77].mxu1 }
 0x20a   : > { %v6082_v40 = vpop.f32.mrb[80].mxu0  ;;  %4727 = vst.msk [vmem:[%s7379_s11 + $0x120] sm:$0xf] %vm4654_vm3, %v5487_v22  ;;  %v5488_v8 = vpack.c.bf16 %v4087_v58, %v4087_v58  ;;  %v6207_v10 = vadd.f32 %v3544_v2, %v2732_v24  ;;  %v5949_v57 = vpop.f32.mrb[78].mxu1 }
 0x20b   : > { %v3560_v20 = vpop.f32.mrb[81].mxu0  ;;  %4730 = vst.msk [vmem:[%s7379_s11 + $0x12c] sm:$0xf] %vm4654_vm3, %v5490_v44  ;;  %v3964_v4 = vadd.f32 %v7709_v15, %v6206_v36  ;;  %v6208_v9 = vadd.f32 %v6079_v41, %v5949_v57  ;;  %v2735_v23 = vpop.f32.mrb[79].mxu1 }
 0x20c   : > { %v6083_v12 = vpop.f32.mrb[82].mxu0  ;;  %4728 = vst.msk [vmem:[%s7379_s11 + $0x124] sm:$0xf] %vm4654_vm3, %v5488_v8  ;;  %v3962_v19 = vadd.f32 %v7709_v15, %v6207_v10  ;;  %v6209_v18 = vadd.f32 %v3547_v28, %v2735_v23 }
 0x20d   : > { %v3563_v33 = vpop.f32.mrb[83].mxu0  ;;  %v4092_v25 = vmax.f32 %v3964_v4, 0.0  ;;  %v3965_v11 = vadd.f32 %v7709_v15, %v6208_v9 }
 0x20e   : > { %v4090_v56 = vmax.f32 %v3962_v19, 0.0  ;;  %v3963_v21 = vadd.f32 %v7709_v15, %v6209_v18 }
 0x20f   : > { %v5493_v26 = vpack.c.bf16 %v4092_v25, %v4092_v25  ;;  %v4093_v13 = vmax.f32 %v3965_v11, 0.0 }
 0x210   : > { %v5491_v62 = vpack.c.bf16 %v4090_v56, %v4090_v56  ;;  %v4091_v59 = vmax.f32 %v3963_v21, 0.0  ;;  %v5952_v60 = vpop.f32.mrb[80].mxu1 }
 0x211   : > { %4733 = vst.msk [vmem:[%s7379_s11 + $0x138] sm:$0xf] %vm4654_vm3, %v5493_v26  ;;  %v5494_v14 = vpack.c.bf16 %v4093_v13, %v4093_v13  ;;  %v6210_v63 = vadd.f32 %v6082_v40, %v5952_v60  ;;  %v2748_v27 = vpop.f32.mrb[81].mxu1 }
 0x212   : > { %v6086_v50 = vpop.f32.mrb[84].mxu0  ;;  %4731 = vst.msk [vmem:[%s7379_s11 + $0x130] sm:$0xf] %vm4654_vm3, %v5491_v62  ;;  %v5492_v2 = vpack.c.bf16 %v4091_v59, %v4091_v59  ;;  %v6211_v0 = vadd.f32 %v3560_v20, %v2748_v27  ;;  %v5953_v39 = vpop.f32.mrb[82].mxu1 }
 0x213   : > { %v3576_v6 = vpop.f32.mrb[85].mxu0  ;;  %4734 = vst.msk [vmem:[%s7379_s11 + $0x13c] sm:$0xf] %vm4654_vm3, %v5494_v14  ;;  %v3968_v41 = vadd.f32 %v7709_v15, %v6210_v63  ;;  %v6212_v3 = vadd.f32 %v6083_v12, %v5953_v39  ;;  %v2751_v31 = vpop.f32.mrb[83].mxu1 }
 0x214   : > { %v6087_v51 = vpop.f32.mrb[86].mxu0  ;;  %4732 = vst.msk [vmem:[%s7379_s11 + $0x134] sm:$0xf] %vm4654_vm3, %v5492_v2  ;;  %v3966_v45 = vadd.f32 %v7709_v15, %v6211_v0  ;;  %v6213_v37 = vadd.f32 %v3563_v33, %v2751_v31 }
 0x215   : > { %v3579_v30 = vpop.f32.mrb[87].mxu0  ;;  %v4096_v32 = vmax.f32 %v3968_v41, 0.0  ;;  %v3969_v34 = vadd.f32 %v7709_v15, %v6212_v3 }
 0x216   : > { %v4094_v7 = vmax.f32 %v3966_v45, 0.0  ;;  %v3967_v43 = vadd.f32 %v7709_v15, %v6213_v37 }
 0x217   : > { %v5497_v17 = vpack.c.bf16 %v4096_v32, %v4096_v32  ;;  %v4097_v48 = vmax.f32 %v3969_v34, 0.0 }
 0x218   : > { %v5495_v42 = vpack.c.bf16 %v4094_v7, %v4094_v7  ;;  %v4095_v46 = vmax.f32 %v3967_v43, 0.0  ;;  %v5956_v1 = vpop.f32.mrb[84].mxu1 }
 0x219   : > { %4737 = vst.msk [vmem:[%s7379_s11 + $0x148] sm:$0xf] %vm4654_vm3, %v5497_v17  ;;  %v5498_v40 = vpack.c.bf16 %v4097_v48, %v4097_v48  ;;  %v6214_v5 = vadd.f32 %v6086_v50, %v5956_v1  ;;  %v2764_v55 = vpop.f32.mrb[85].mxu1 }
 0x21a   : > { %v6090_v28 = vpop.f32.mrb[88].mxu0  ;;  %4735 = vst.msk [vmem:[%s7379_s11 + $0x140] sm:$0xf] %vm4654_vm3, %v5495_v42  ;;  %v5496_v20 = vpack.c.bf16 %v4095_v46, %v4095_v46  ;;  %v6215_v49 = vadd.f32 %v3576_v6, %v2764_v55  ;;  %v5957_v38 = vpop.f32.mrb[86].mxu1 }
 0x21b   : > { %v3592_v53 = vpop.f32.mrb[89].mxu0  ;;  %4738 = vst.msk [vmem:[%s7379_s11 + $0x14c] sm:$0xf] %vm4654_vm3, %v5498_v40  ;;  %v3972_v12 = vadd.f32 %v7709_v15, %v6214_v5  ;;  %v6216_v47 = vadd.f32 %v6087_v51, %v5957_v38  ;;  %v2767_v35 = vpop.f32.mrb[87].mxu1 }
 0x21c   : > { %v6091_v16 = vpop.f32.mrb[90].mxu0  ;;  %4736 = vst.msk [vmem:[%s7379_s11 + $0x144] sm:$0xf] %vm4654_vm3, %v5496_v20  ;;  %v3970_v61 = vadd.f32 %v7709_v15, %v6215_v49  ;;  %v6217_v29 = vadd.f32 %v3579_v30, %v2767_v35 }
 0x21d   : > { %v3595_v54 = vpop.f32.mrb[91].mxu0  ;;  %v4100_v58 = vmax.f32 %v3972_v12, 0.0  ;;  %v3973_v52 = vadd.f32 %v7709_v15, %v6216_v47 }
 0x21e   : > { %v4098_v36 = vmax.f32 %v3970_v61, 0.0  ;;  %v3971_v24 = vadd.f32 %v7709_v15, %v6217_v29 }
 0x21f   : > { %v5501_v10 = vpack.c.bf16 %v4100_v58, %v4100_v58  ;;  %v4101_v57 = vmax.f32 %v3973_v52, 0.0 }
 0x220   : > { %v5499_v4 = vpack.c.bf16 %v4098_v36, %v4098_v36  ;;  %v4099_v9 = vmax.f32 %v3971_v24, 0.0  ;;  %v5960_v23 = vpop.f32.mrb[88].mxu1 }
 0x221   : > { %4741 = vst.msk [vmem:[%s7379_s11 + $0x158] sm:$0xf] %vm4654_vm3, %v5501_v10  ;;  %v5502_v50 = vpack.c.bf16 %v4101_v57, %v4101_v57  ;;  %v6218_v19 = vadd.f32 %v6090_v28, %v5960_v23  ;;  %v2780_v18 = vpop.f32.mrb[89].mxu1 }
 0x222   : > { %v6094_v33 = vpop.f32.mrb[92].mxu0  ;;  %4739 = vst.msk [vmem:[%s7379_s11 + $0x150] sm:$0xf] %vm4654_vm3, %v5499_v4  ;;  %v5500_v6 = vpack.c.bf16 %v4099_v9, %v4099_v9  ;;  %v6219_v25 = vadd.f32 %v3592_v53, %v2780_v18  ;;  %v5961_v11 = vpop.f32.mrb[90].mxu1 }
 0x223   : > { %v3608_v22 = vpop.f32.mrb[93].mxu0  ;;  %4742 = vst.msk [vmem:[%s7379_s11 + $0x15c] sm:$0xf] %vm4654_vm3, %v5502_v50  ;;  %v3976_v51 = vadd.f32 %v7709_v15, %v6218_v19  ;;  %v6220_v56 = vadd.f32 %v6091_v16, %v5961_v11  ;;  %v2783_v21 = vpop.f32.mrb[91].mxu1 }
 0x224   : > { %v6095_v44 = vpop.f32.mrb[94].mxu0  ;;  %4740 = vst.msk [vmem:[%s7379_s11 + $0x154] sm:$0xf] %vm4654_vm3, %v5500_v6  ;;  %v3974_v26 = vadd.f32 %v7709_v15, %v6219_v25  ;;  %v6221_v13 = vadd.f32 %v3595_v54, %v2783_v21 }
 0x225   : > { %v3611_v8 = vpop.f32.mrb[95].mxu0  ;;  %v4104_v59 = vmax.f32 %v3976_v51, 0.0  ;;  %v3977_v60 = vadd.f32 %v7709_v15, %v6220_v56 }
 0x226   : > { %v4102_v63 = vmax.f32 %v3974_v26, 0.0  ;;  %v3975_v27 = vadd.f32 %v7709_v15, %v6221_v13 }
 0x227   : > { %v5505_v0 = vpack.c.bf16 %v4104_v59, %v4104_v59  ;;  %v4105_v39 = vmax.f32 %v3977_v60, 0.0 }
 0x228   : > { %v5503_v41 = vpack.c.bf16 %v4102_v63, %v4102_v63  ;;  %v4103_v3 = vmax.f32 %v3975_v27, 0.0  ;;  %v5964_v31 = vpop.f32.mrb[92].mxu1 }
 0x229   : > { %4745 = vst.msk [vmem:[%s7379_s11 + $0x168] sm:$0xf] %vm4654_vm3, %v5505_v0  ;;  %v5506_v28 = vpack.c.bf16 %v4105_v39, %v4105_v39  ;;  %v6222_v45 = vadd.f32 %v6094_v33, %v5964_v31  ;;  %v2796_v37 = vpop.f32.mrb[93].mxu1 }
 0x22a   : > { %v6098_v30 = vpop.f32.mrb[96].mxu0  ;;  %4743 = vst.msk [vmem:[%s7379_s11 + $0x160] sm:$0xf] %vm4654_vm3, %v5503_v41  ;;  %v5504_v53 = vpack.c.bf16 %v4103_v3, %v4103_v3  ;;  %v6223_v32 = vadd.f32 %v3608_v22, %v2796_v37  ;;  %v5965_v34 = vpop.f32.mrb[94].mxu1 }
 0x22b   : > { %v3624_v62 = vpop.f32.mrb[97].mxu0  ;;  %4746 = vst.msk [vmem:[%s7379_s11 + $0x16c] sm:$0xf] %vm4654_vm3, %v5506_v28  ;;  %v3980_v16 = vadd.f32 %v7709_v15, %v6222_v45  ;;  %v6224_v7 = vadd.f32 %v6095_v44, %v5965_v34  ;;  %v2799_v43 = vpop.f32.mrb[95].mxu1 }
 0x22c   : > { %v6099_v14 = vpop.f32.mrb[98].mxu0  ;;  %4744 = vst.msk [vmem:[%s7379_s11 + $0x164] sm:$0xf] %vm4654_vm3, %v5504_v53  ;;  %v3978_v17 = vadd.f32 %v7709_v15, %v6223_v32  ;;  %v6225_v48 = vadd.f32 %v3611_v8, %v2799_v43 }
 0x22d   : > { %v3627_v2 = vpop.f32.mrb[99].mxu0  ;;  %v4108_v46 = vmax.f32 %v3980_v16, 0.0  ;;  %v3981_v1 = vadd.f32 %v7709_v15, %v6224_v7 }
 0x22e   : > { %v4106_v5 = vmax.f32 %v3978_v17, 0.0  ;;  %v3979_v55 = vadd.f32 %v7709_v15, %v6225_v48 }
 0x22f   : > { %v5509_v49 = vpack.c.bf16 %v4108_v46, %v4108_v46  ;;  %v4109_v38 = vmax.f32 %v3981_v1, 0.0 }
 0x230   : > { %v5507_v12 = vpack.c.bf16 %v4106_v5, %v4106_v5  ;;  %v4107_v47 = vmax.f32 %v3979_v55, 0.0  ;;  %v5968_v35 = vpop.f32.mrb[96].mxu1 }
 0x231   : > { %4749 = vst.msk [vmem:[%s7379_s11 + $0x178] sm:$0xf] %vm4654_vm3, %v5509_v49  ;;  %v5510_v33 = vpack.c.bf16 %v4109_v38, %v4109_v38  ;;  %v6226_v61 = vadd.f32 %v6098_v30, %v5968_v35  ;;  %v2812_v29 = vpop.f32.mrb[97].mxu1 }
 0x232   : > { %v6102_v54 = vpop.f32.mrb[100].mxu0  ;;  %4747 = vst.msk [vmem:[%s7379_s11 + $0x170] sm:$0xf] %vm4654_vm3, %v5507_v12  ;;  %v5508_v22 = vpack.c.bf16 %v4107_v47, %v4107_v47  ;;  %v6227_v58 = vadd.f32 %v3624_v62, %v2812_v29  ;;  %v5969_v52 = vpop.f32.mrb[98].mxu1 }
 0x233   : > { %v3640_v42 = vpop.f32.mrb[101].mxu0  ;;  %4750 = vst.msk [vmem:[%s7379_s11 + $0x17c] sm:$0xf] %vm4654_vm3, %v5510_v33  ;;  %v3984_v44 = vadd.f32 %v7709_v15, %v6226_v61  ;;  %v6228_v36 = vadd.f32 %v6099_v14, %v5969_v52  ;;  %v2815_v24 = vpop.f32.mrb[99].mxu1 }
 0x234   : > { %v6103_v40 = vpop.f32.mrb[102].mxu0  ;;  %4748 = vst.msk [vmem:[%s7379_s11 + $0x174] sm:$0xf] %vm4654_vm3, %v5508_v22  ;;  %v3982_v10 = vadd.f32 %v7709_v15, %v6227_v58  ;;  %v6229_v57 = vadd.f32 %v3627_v2, %v2815_v24 }
 0x235   : > { %v3643_v20 = vpop.f32.mrb[103].mxu0  ;;  %v4112_v9 = vmax.f32 %v3984_v44, 0.0  ;;  %v3985_v23 = vadd.f32 %v7709_v15, %v6228_v36 }
 0x236   : > { %v4110_v19 = vmax.f32 %v3982_v10, 0.0  ;;  %v3983_v18 = vadd.f32 %v7709_v15, %v6229_v57 }
 0x237   : > { %v5513_v25 = vpack.c.bf16 %v4112_v9, %v4112_v9  ;;  %v4113_v11 = vmax.f32 %v3985_v23, 0.0 }
 0x238   : > { %v5511_v51 = vpack.c.bf16 %v4110_v19, %v4110_v19  ;;  %v4111_v56 = vmax.f32 %v3983_v18, 0.0  ;;  %v5972_v21 = vpop.f32.mrb[100].mxu1 }
 0x239   : > { %4753 = vst.msk [vmem:[%s7379_s11 + $0x188] sm:$0xf] %vm4654_vm3, %v5513_v25  ;;  %v5514_v30 = vpack.c.bf16 %v4113_v11, %v4113_v11  ;;  %v6230_v26 = vadd.f32 %v6102_v54, %v5972_v21  ;;  %v2828_v13 = vpop.f32.mrb[101].mxu1 }
 0x23a   : > { %v6106_v8 = vpop.f32.mrb[104].mxu0  ;;  %4751 = vst.msk [vmem:[%s7379_s11 + $0x180] sm:$0xf] %vm4654_vm3, %v5511_v51  ;;  %v5512_v62 = vpack.c.bf16 %v4111_v56, %v4111_v56  ;;  %v6231_v59 = vadd.f32 %v3640_v42, %v2828_v13  ;;  %v5973_v60 = vpop.f32.mrb[102].mxu1 }
 0x23b   : > { %v3656_v4 = vpop.f32.mrb[105].mxu0  ;;  %4754 = vst.msk [vmem:[%s7379_s11 + $0x18c] sm:$0xf] %vm4654_vm3, %v5514_v30  ;;  %v3988_v14 = vadd.f32 %v7709_v15, %v6230_v26  ;;  %v6232_v63 = vadd.f32 %v6103_v40, %v5973_v60  ;;  %v2831_v27 = vpop.f32.mrb[103].mxu1 }
 0x23c   : > { %v6107_v50 = vpop.f32.mrb[106].mxu0  ;;  %4752 = vst.msk [vmem:[%s7379_s11 + $0x184] sm:$0xf] %vm4654_vm3, %v5512_v62  ;;  %v3986_v0 = vadd.f32 %v7709_v15, %v6231_v59  ;;  %v6233_v39 = vadd.f32 %v3643_v20, %v2831_v27 }
 0x23d   : > { %v3659_v6 = vpop.f32.mrb[107].mxu0  ;;  %v4116_v3 = vmax.f32 %v3988_v14, 0.0  ;;  %v3989_v31 = vadd.f32 %v7709_v15, %v6232_v63 }
 0x23e   : > { %v4114_v45 = vmax.f32 %v3986_v0, 0.0  ;;  %v3987_v37 = vadd.f32 %v7709_v15, %v6233_v39 }
 0x23f   : > { %v5517_v32 = vpack.c.bf16 %v4116_v3, %v4116_v3  ;;  %v4117_v34 = vmax.f32 %v3989_v31, 0.0 }
 0x240   : > { %v5515_v16 = vpack.c.bf16 %v4114_v45, %v4114_v45  ;;  %v4115_v7 = vmax.f32 %v3987_v37, 0.0  ;;  %v5976_v43 = vpop.f32.mrb[104].mxu1 }
 0x241   : > { %4757 = vst.msk [vmem:[%s7379_s11 + $0x198] sm:$0xf] %vm4654_vm3, %v5517_v32  ;;  %v5518_v54 = vpack.c.bf16 %v4117_v34, %v4117_v34  ;;  %v6234_v17 = vadd.f32 %v6106_v8, %v5976_v43  ;;  %v2844_v48 = vpop.f32.mrb[105].mxu1 }
 0x242   : > { %v6110_v2 = vpop.f32.mrb[108].mxu0  ;;  %4755 = vst.msk [vmem:[%s7379_s11 + $0x190] sm:$0xf] %vm4654_vm3, %v5515_v16  ;;  %v5516_v42 = vpack.c.bf16 %v4115_v7, %v4115_v7  ;;  %v6235_v46 = vadd.f32 %v3656_v4, %v2844_v48  ;;  %v5977_v1 = vpop.f32.mrb[106].mxu1 }
 0x243   : > { %v3672_v41 = vpop.f32.mrb[109].mxu0  ;;  %4758 = vst.msk [vmem:[%s7379_s11 + $0x19c] sm:$0xf] %vm4654_vm3, %v5518_v54  ;;  %v3992_v40 = vadd.f32 %v7709_v15, %v6234_v17  ;;  %v6236_v5 = vadd.f32 %v6107_v50, %v5977_v1  ;;  %v2847_v55 = vpop.f32.mrb[107].mxu1 }
 0x244   : > { %v6111_v28 = vpop.f32.mrb[110].mxu0  ;;  %4756 = vst.msk [vmem:[%s7379_s11 + $0x194] sm:$0xf] %vm4654_vm3, %v5516_v42  ;;  %v3990_v49 = vadd.f32 %v7709_v15, %v6235_v46  ;;  %v6237_v38 = vadd.f32 %v3659_v6, %v2847_v55 }
 0x245   : > { %v3675_v53 = vpop.f32.mrb[111].mxu0  ;;  %v4120_v47 = vmax.f32 %v3992_v40, 0.0  ;;  %v3993_v35 = vadd.f32 %v7709_v15, %v6236_v5 }
 0x246   : > { %v4118_v61 = vmax.f32 %v3990_v49, 0.0  ;;  %v3991_v29 = vadd.f32 %v7709_v15, %v6237_v38 }
 0x247   : > { %v5521_v58 = vpack.c.bf16 %v4120_v47, %v4120_v47  ;;  %v4121_v52 = vmax.f32 %v3993_v35, 0.0 }
 0x248   : > { %v5519_v44 = vpack.c.bf16 %v4118_v61, %v4118_v61  ;;  %v4119_v36 = vmax.f32 %v3991_v29, 0.0  ;;  %v5980_v24 = vpop.f32.mrb[108].mxu1 }
 0x249   : > { %4761 = vst.msk [vmem:[%s7379_s11 + $0x1a8] sm:$0xf] %vm4654_vm3, %v5521_v58  ;;  %v5522_v8 = vpack.c.bf16 %v4121_v52, %v4121_v52  ;;  %v6238_v10 = vadd.f32 %v6110_v2, %v5980_v24  ;;  %v2860_v57 = vpop.f32.mrb[109].mxu1 }
 0x24a   : > { %v6114_v20 = vpop.f32.mrb[112].mxu0  ;;  %4759 = vst.msk [vmem:[%s7379_s11 + $0x1a0] sm:$0xf] %vm4654_vm3, %v5519_v44  ;;  %v5520_v4 = vpack.c.bf16 %v4119_v36, %v4119_v36  ;;  %v6239_v9 = vadd.f32 %v3672_v41, %v2860_v57  ;;  %v5981_v23 = vpop.f32.mrb[110].mxu1 }
 0x24b   : > { %v3688_v12 = vpop.f32.mrb[113].mxu0  ;;  %4762 = vst.msk [vmem:[%s7379_s11 + $0x1ac] sm:$0xf] %vm4654_vm3, %v5522_v8  ;;  %v3996_v50 = vadd.f32 %v7709_v15, %v6238_v10  ;;  %v6240_v19 = vadd.f32 %v6111_v28, %v5981_v23  ;;  %v2863_v18 = vpop.f32.mrb[111].mxu1 }
 0x24c   : > { %v6115_v33 = vpop.f32.mrb[114].mxu0  ;;  %4760 = vst.msk [vmem:[%s7379_s11 + $0x1a4] sm:$0xf] %vm4654_vm3, %v5520_v4  ;;  %v3994_v25 = vadd.f32 %v7709_v15, %v6239_v9  ;;  %v6241_v11 = vadd.f32 %v3675_v53, %v2863_v18 }
 0x24d   : > { %v3691_v22 = vpop.f32.mrb[115].mxu0  ;;  %v4124_v56 = vmax.f32 %v3996_v50, 0.0  ;;  %v3997_v21 = vadd.f32 %v7709_v15, %v6240_v19 }
 0x24e   : > { %v4122_v26 = vmax.f32 %v3994_v25, 0.0  ;;  %v3995_v13 = vadd.f32 %v7709_v15, %v6241_v11 }
 0x24f   : > { %v5525_v59 = vpack.c.bf16 %v4124_v56, %v4124_v56  ;;  %v4125_v60 = vmax.f32 %v3997_v21, 0.0 }
 0x250   : > { %v5523_v14 = vpack.c.bf16 %v4122_v26, %v4122_v26  ;;  %v4123_v63 = vmax.f32 %v3995_v13, 0.0  ;;  %v5984_v27 = vpop.f32.mrb[112].mxu1 }
 0x251   : > { %4765 = vst.msk [vmem:[%s7379_s11 + $0x1b8] sm:$0xf] %vm4654_vm3, %v5525_v59  ;;  %v5526_v2 = vpack.c.bf16 %v4125_v60, %v4125_v60  ;;  %v6242_v0 = vadd.f32 %v6114_v20, %v5984_v27  ;;  %v2876_v39 = vpop.f32.mrb[113].mxu1 }
 0x252   : > { %v6118_v6 = vpop.f32.mrb[116].mxu0  ;;  %4763 = vst.msk [vmem:[%s7379_s11 + $0x1b0] sm:$0xf] %vm4654_vm3, %v5523_v14  ;;  %v5524_v41 = vpack.c.bf16 %v4123_v63, %v4123_v63  ;;  %v6243_v3 = vadd.f32 %v3688_v12, %v2876_v39  ;;  %v5985_v31 = vpop.f32.mrb[114].mxu1 }
 0x253   : > { %v3704_v51 = vpop.f32.mrb[117].mxu0  ;;  %4766 = vst.msk [vmem:[%s7379_s11 + $0x1bc] sm:$0xf] %vm4654_vm3, %v5526_v2  ;;  %v4000_v28 = vadd.f32 %v7709_v15, %v6242_v0  ;;  %v6244_v45 = vadd.f32 %v6115_v33, %v5985_v31  ;;  %v2879_v37 = vpop.f32.mrb[115].mxu1 }
 0x254   : > { %v6119_v30 = vpop.f32.mrb[118].mxu0  ;;  %4764 = vst.msk [vmem:[%s7379_s11 + $0x1b4] sm:$0xf] %vm4654_vm3, %v5524_v41  ;;  %v3998_v32 = vadd.f32 %v7709_v15, %v6243_v3  ;;  %v6245_v34 = vadd.f32 %v3691_v22, %v2879_v37 }
 0x255   : > { %v3707_v62 = vpop.f32.mrb[119].mxu0  ;;  %v4128_v7 = vmax.f32 %v4000_v28, 0.0  ;;  %v4001_v43 = vadd.f32 %v7709_v15, %v6244_v45 }
 0x256   : > { %v4126_v17 = vmax.f32 %v3998_v32, 0.0  ;;  %v3999_v48 = vadd.f32 %v7709_v15, %v6245_v34 }
 0x257   : > { %v5529_v46 = vpack.c.bf16 %v4128_v7, %v4128_v7  ;;  %v4129_v1 = vmax.f32 %v4001_v43, 0.0 }
 0x258   : > { %v5527_v40 = vpack.c.bf16 %v4126_v17, %v4126_v17  ;;  %v4127_v5 = vmax.f32 %v3999_v48, 0.0  ;;  %v5988_v55 = vpop.f32.mrb[116].mxu1 }
 0x259   : > { %4769 = vst.msk [vmem:[%s7379_s11 + $0x1c8] sm:$0xf] %vm4654_vm3, %v5529_v46  ;;  %v5530_v20 = vpack.c.bf16 %v4129_v1, %v4129_v1  ;;  %v6246_v49 = vadd.f32 %v6118_v6, %v5988_v55  ;;  %v2892_v38 = vpop.f32.mrb[117].mxu1 }
 0x25a   : > { %v6122_v53 = vpop.f32.mrb[120].mxu0  ;;  %4767 = vst.msk [vmem:[%s7379_s11 + $0x1c0] sm:$0xf] %vm4654_vm3, %v5527_v40  ;;  %v5528_v12 = vpack.c.bf16 %v4127_v5, %v4127_v5  ;;  %v6247_v47 = vadd.f32 %v3704_v51, %v2892_v38  ;;  %v5989_v35 = vpop.f32.mrb[118].mxu1 }
 0x25b   : > { %v3720_v16 = vpop.f32.mrb[121].mxu0  ;;  %4770 = vst.msk [vmem:[%s7379_s11 + $0x1cc] sm:$0xf] %vm4654_vm3, %v5530_v20  ;;  %v4004_v33 = vadd.f32 %v7709_v15, %v6246_v49  ;;  %v6248_v61 = vadd.f32 %v6119_v30, %v5989_v35  ;;  %v2895_v29 = vpop.f32.mrb[119].mxu1 }
 0x25c   : > { %v6123_v54 = vpop.f32.mrb[122].mxu0  ;;  %4768 = vst.msk [vmem:[%s7379_s11 + $0x1c4] sm:$0xf] %vm4654_vm3, %v5528_v12  ;;  %v4002_v58 = vadd.f32 %v7709_v15, %v6247_v47  ;;  %v6249_v52 = vadd.f32 %v3707_v62, %v2895_v29 }
 0x25d   : > { %v3723_v42 = vpop.f32.mrb[123].mxu0  ;;  %v4132_v36 = vmax.f32 %v4004_v33, 0.0  ;;  %v4005_v24 = vadd.f32 %v7709_v15, %v6248_v61 }
 0x25e   : > { %v4130_v10 = vmax.f32 %v4002_v58, 0.0  ;;  %v4003_v57 = vadd.f32 %v7709_v15, %v6249_v52 }
 0x25f   : > { %v5533_v9 = vpack.c.bf16 %v4132_v36, %v4132_v36  ;;  %v4133_v23 = vmax.f32 %v4005_v24, 0.0 }
 0x260   : > { %v5531_v50 = vpack.c.bf16 %v4130_v10, %v4130_v10  ;;  %v4131_v19 = vmax.f32 %v4003_v57, 0.0 }
 0x261   : > { %v5992_v18 = vpop.f32.mrb[120].mxu1  ;;  %4773 = vst.msk [vmem:[%s7379_s11 + $0x1d8] sm:$0xf] %vm4654_vm3, %v5533_v9  ;;  %v5534_v6 = vpack.c.bf16 %v4133_v23, %v4133_v23 }
 0x262   : > { %v6126_v22 = vpop.f32.mrb[124].mxu0  ;;  %v6250_v25 = vadd.f32 %v6122_v53, %v5992_v18  ;;  %v2908_v11 = vpop.f32.mrb[121].mxu1  ;;  %4771 = vst.msk [vmem:[%s7379_s11 + $0x1d0] sm:$0xf] %vm4654_vm3, %v5531_v50  ;;  %v5532_v51 = vpack.c.bf16 %v4131_v19, %v4131_v19 }
 0x263   : > { %v3736_v44 = vpop.f32.mrb[125].mxu0  ;;  %v6251_v56 = vadd.f32 %v3720_v16, %v2908_v11  ;;  %v5993_v21 = vpop.f32.mrb[122].mxu1  ;;  %4774 = vst.msk [vmem:[%s7379_s11 + $0x1dc] sm:$0xf] %vm4654_vm3, %v5534_v6 }
 0x264   : > { %v6127_v8 = vpop.f32.mrb[126].mxu0  ;;  %v4008_v30 = vadd.f32 %v7709_v15, %v6250_v25  ;;  %v6252_v26 = vadd.f32 %v6123_v54, %v5993_v21  ;;  %v2911_v13 = vpop.f32.mrb[123].mxu1  ;;  %4772 = vst.msk [vmem:[%s7379_s11 + $0x1d4] sm:$0xf] %vm4654_vm3, %v5532_v51 }
 0x265   : > { %v3739_v4 = vpop.f32.mrb[127].mxu0  ;;  %v4006_v62 = vadd.f32 %v7709_v15, %v6251_v56  ;;  %v6253_v59 = vadd.f32 %v3723_v42, %v2911_v13 }
 0x266   : > { %v4136_v60 = vmax.f32 %v4008_v30, 0.0  ;;  %v4009_v14 = vadd.f32 %v7709_v15, %v6252_v26 }
 0x267   : > { %v4134_v63 = vmax.f32 %v4006_v62, 0.0  ;;  %v4007_v27 = vadd.f32 %v7709_v15, %v6253_v59 }
 0x268   : > { %v5537_v2 = vpack.c.bf16 %v4136_v60, %v4136_v60  ;;  %v4137_v0 = vmax.f32 %v4009_v14, 0.0 }
 0x269   : > { %v5535_v39 = vpack.c.bf16 %v4134_v63, %v4134_v63  ;;  %v4135_v41 = vmax.f32 %v4007_v27, 0.0  ;;  %v5996_v3 = vpop.f32.mrb[124].mxu1 }
 0x26a   : > { %4777 = vst.msk [vmem:[%s7379_s11 + $0x1e8] sm:$0xf] %vm4654_vm3, %v5537_v2  ;;  %v5538_v31 = vpack.c.bf16 %v4137_v0, %v4137_v0  ;;  %v6254_v28 = vadd.f32 %v6126_v22, %v5996_v3  ;;  %v2924_v45 = vpop.f32.mrb[125].mxu1 }
 0x26b   : > { %4775 = vst.msk [vmem:[%s7379_s11 + $0x1e0] sm:$0xf] %vm4654_vm3, %v5535_v39  ;;  %v5536_v37 = vpack.c.bf16 %v4135_v41, %v4135_v41  ;;  %v6255_v53 = vadd.f32 %v3736_v44, %v2924_v45  ;;  %v5997_v32 = vpop.f32.mrb[126].mxu1 }
 0x26c   : > { %4778 = vst.msk [vmem:[%s7379_s11 + $0x1ec] sm:$0xf] %vm4654_vm3, %v5538_v31  ;;  %v4012_v34 = vadd.f32 %v7709_v15, %v6254_v28  ;;  %v6256_v16 = vadd.f32 %v6127_v8, %v5997_v32  ;;  %v2927_v7 = vpop.f32.mrb[127].mxu1 }
 0x26d   : > { %4776 = vst.msk [vmem:[%s7379_s11 + $0x1e4] sm:$0xf] %vm4654_vm3, %v5536_v37  ;;  %v4010_v43 = vadd.f32 %v7709_v15, %v6255_v53  ;;  %v6257_v54 = vadd.f32 %v3739_v4, %v2927_v7 }
 0x26e   : > { %v4140_v17 = vmax.f32 %v4012_v34, 0.0  ;;  %v4013_v48 = vadd.f32 %v7709_v15, %v6256_v16 }
 0x26f   : > { %v4138_v42 = vmax.f32 %v4010_v43, 0.0  ;;  %v4011_v46 = vadd.f32 %v7709_v15, %v6257_v54 }
 0x270   : > { %v5541_v1 = vpack.c.bf16 %v4140_v17, %v4140_v17  ;;  %v4141_v40 = vmax.f32 %v4013_v48, 0.0 }
 0x271   : > { %v5539_v5 = vpack.c.bf16 %v4138_v42, %v4138_v42  ;;  %v4139_v55 = vmax.f32 %v4011_v46, 0.0 }
 0x272   : > { %4781 = vst.msk [vmem:[%s7379_s11 + $0x1f8] sm:$0xf] %vm4654_vm3, %v5541_v1  ;;  %v5542_v20 = vpack.c.bf16 %v4141_v40, %v4141_v40 }
 0x273   : > { %4779 = vst.msk [vmem:[%s7379_s11 + $0x1f0] sm:$0xf] %vm4654_vm3, %v5539_v5  ;;  %v5540_v49 = vpack.c.bf16 %v4139_v55, %v4139_v55 }
 0x274   : > { %4782 = vst.msk [vmem:[%s7379_s11 + $0x1fc] sm:$0xf] %vm4654_vm3, %v5542_v20 }
 0x275   : > { %4780 = vst.msk [vmem:[%s7379_s11 + $0x1f4] sm:$0xf] %vm4654_vm3, %v5540_v49 }
 0x276 PF: > { %s14_s17 = sadd.s32 1, %s6569_s17   ;;  %s7917_s15 = smov %s6565_s16 }
 0x277   : > { %p11_p5 = scmp.ge.s32.totalorder %s14_s17, 4   ;;  %s7918_s16 = smov %s7920_s18 }
 0x279   :  { %13 = sbr.rel (!%p11_p5) target bundleno = 2 (0x2), region = 77 }

</bundles_post_ra>
